<compile_context>
chip_gen: v7x
topology: tpu7x:2x2x1
jax: 0.10.0
libtpu: 0.0.40
codegen_flags: <defaults>
</compile_context>

<pallas_src>
import functools

import jax
import jax.numpy as jnp
from jax.experimental import pallas as pl
from jax.experimental.pallas import tpu as pltpu


_VMEM_LIMIT = 32 * 1024 * 1024  # safe on v5e/v6e/v7x


def _pick_tile(dim, preferred):
    """Largest preferred tile that divides `dim`, else the full dim."""
    for t in preferred:
        if dim >= t and dim % t == 0:
            return t
    return dim


# ---------------------------------------------------------------------------
# Tiled linear:  y = act(x @ w + b)
# ---------------------------------------------------------------------------
def _linear_kernel(x_ref, w_ref, b_ref, o_ref, acc_ref, *, activation, n_k):
    @pl.when(pl.program_id(2) == 0)
    def _():
        acc_ref[...] = jnp.zeros_like(acc_ref)

    acc_ref[...] += jnp.dot(x_ref[...].astype(jnp.bfloat16), w_ref[...],
                            preferred_element_type=jnp.float32)

    @pl.when(pl.program_id(2) == n_k - 1)
    def _():
        y = acc_ref[...] + b_ref[...]
        if activation == "gelu":
            # TODO(synk): HF BERT uses exact (erf) GELU; tanh approximation here.
            y = jax.nn.gelu(y, approximate=True)
        elif activation == "tanh":
            y = jnp.tanh(y)
        o_ref[...] = y.astype(o_ref.dtype)


def linear(x, w, b, activation=None):
    """x:(M,K) fp32, w:(K,N) bf16, b:(N,) fp32 -> (M,N) fp32."""
    M, K = x.shape
    N = w.shape[1]
    tm = _pick_tile(M, (256, 128))
    tn = _pick_tile(N, (256, 128))
    tk = _pick_tile(K, (512, 256, 128))
    n_k = K // tk
    kern = functools.partial(_linear_kernel, activation=activation, n_k=n_k)
    cost = pl.CostEstimate(
        flops=2 * M * K * N,
        transcendentals=M * N if activation in ("gelu", "tanh") else 0,
        bytes_accessed=x.size * x.dtype.itemsize + w.size * w.dtype.itemsize
        + 4 * M * N)
    return pl.pallas_call(
        kern,
        out_shape=jax.ShapeDtypeStruct((M, N), jnp.float32),
        grid=(M // tm, N // tn, n_k),
        in_specs=[
            pl.BlockSpec((tm, tk), lambda i, j, k: (i, k)),
            pl.BlockSpec((tk, tn), lambda i, j, k: (k, j)),
            pl.BlockSpec((1, tn), lambda i, j, k: (0, j)),
        ],
        out_specs=pl.BlockSpec((tm, tn), lambda i, j, k: (i, j)),
        scratch_shapes=[pltpu.VMEM((tm, tn), jnp.float32)],
        compiler_params=pltpu.CompilerParams(
            dimension_semantics=("parallel", "parallel", "arbitrary"),
            vmem_limit_bytes=_VMEM_LIMIT),
        cost_estimate=cost,
    )(x, w, b.reshape(1, N))


# ---------------------------------------------------------------------------
# Tiled linear with fused residual-add + LayerNorm epilogue:
#   y = LayerNorm(x @ w + b + residual)
# ---------------------------------------------------------------------------
def _linear_res_ln_kernel(x_ref, w_ref, b_ref, r_ref, g_ref, bt_ref, o_ref,
                          acc_ref, *, eps, n_k):
    @pl.when(pl.program_id(1) == 0)
    def _():
        acc_ref[...] = jnp.zeros_like(acc_ref)

    acc_ref[...] += jnp.dot(x_ref[...].astype(jnp.bfloat16), w_ref[...],
                            preferred_element_type=jnp.float32)

    @pl.when(pl.program_id(1) == n_k - 1)
    def _():
        y = acc_ref[...] + b_ref[...] + r_ref[...]
        mean = jnp.mean(y, axis=-1, keepdims=True)
        var = jnp.mean(jnp.square(y - mean), axis=-1, keepdims=True)
        o_ref[...] = ((y - mean) * jax.lax.rsqrt(var + eps)
                      * g_ref[...] + bt_ref[...]).astype(o_ref.dtype)


def linear_residual_layer_norm(x, w, b, residual, gamma, beta, eps=1e-12):
    """x:(M,K) fp32, w:(K,N) bf16, residual:(M,N) fp32 -> LN(x@w+b+residual)."""
    M, K = x.shape
    N = w.shape[1]
    tm = _pick_tile(M, (256, 128))
    tk = _pick_tile(K, (512, 256, 128))
    n_k = K // tk
    kern = functools.partial(_linear_res_ln_kernel, eps=eps, n_k=n_k)
    cost = pl.CostEstimate(
        flops=2 * M * K * N + 8 * M * N,
        transcendentals=M,
        bytes_accessed=x.size * x.dtype.itemsize + w.size * w.dtype.itemsize
        + 8 * M * N)
    return pl.pallas_call(
        kern,
        out_shape=jax.ShapeDtypeStruct((M, N), jnp.float32),
        grid=(M // tm, n_k),
        in_specs=[
            pl.BlockSpec((tm, tk), lambda i, k: (i, k)),
            pl.BlockSpec((tk, N), lambda i, k: (k, 0)),
            pl.BlockSpec((1, N), lambda i, k: (0, 0)),
            # residual block index is constant over k -> fetched once per M tile
            pl.BlockSpec((tm, N), lambda i, k: (i, 0)),
            pl.BlockSpec((1, N), lambda i, k: (0, 0)),
            pl.BlockSpec((1, N), lambda i, k: (0, 0)),
        ],
        out_specs=pl.BlockSpec((tm, N), lambda i, k: (i, 0)),
        scratch_shapes=[pltpu.VMEM((tm, N), jnp.float32)],
        compiler_params=pltpu.CompilerParams(
            dimension_semantics=("parallel", "arbitrary"),
            vmem_limit_bytes=_VMEM_LIMIT),
        cost_estimate=cost,
    )(x, w, b.reshape(1, N), residual, gamma.reshape(1, N), beta.reshape(1, N))


# ---------------------------------------------------------------------------
# Row-tiled LayerNorm (no residual) — used for the embedding output.
# ---------------------------------------------------------------------------
def _ln_kernel(x_ref, g_ref, b_ref, o_ref, *, eps):
    x = x_ref[...]
    mean = jnp.mean(x, axis=-1, keepdims=True)
    var = jnp.mean(jnp.square(x - mean), axis=-1, keepdims=True)
    o_ref[...] = (x - mean) * jax.lax.rsqrt(var + eps) * g_ref[...] + b_ref[...]


def layer_norm(x, gamma, beta, eps=1e-12):
    M, H = x.shape
    tm = _pick_tile(M, (512, 256, 128))
    kern = functools.partial(_ln_kernel, eps=eps)
    return pl.pallas_call(
        kern,
        out_shape=jax.ShapeDtypeStruct((M, H), jnp.float32),
        grid=(M // tm,),
        in_specs=[
            pl.BlockSpec((tm, H), lambda i: (i, 0)),
            pl.BlockSpec((1, H), lambda i: (0, 0)),
            pl.BlockSpec((1, H), lambda i: (0, 0)),
        ],
        out_specs=pl.BlockSpec((tm, H), lambda i: (i, 0)),
        compiler_params=pltpu.CompilerParams(
            dimension_semantics=("parallel",),
            vmem_limit_bytes=_VMEM_LIMIT),
    )(x, gamma.reshape(1, H), beta.reshape(1, H))


# ---------------------------------------------------------------------------
# Self-attention core on the fused QKV layout.
#   qkv: (B, S, 3H), mask: (B, 1, S) additive  ->  ctx: (B, S, H)
# One grid step per batch; per-head slices inside the kernel; lane-dense (S,H)
# output store (no head transposes outside the kernel).
# ---------------------------------------------------------------------------
def _attn_kernel(qkv_ref, mask_ref, o_ref, *, n_heads, head_dim, scale):
    qkv = qkv_ref[0]               # (S, 3H) fp32
    mask = mask_ref[0]             # (1, S) additive mask, broadcasts over rows
    H = n_heads * head_dim
    ctx = []
    for h in range(n_heads):       # static unroll over heads
        q = qkv[:, h * head_dim:(h + 1) * head_dim].astype(jnp.bfloat16)
        k = qkv[:, H + h * head_dim:H + (h + 1) * head_dim].astype(jnp.bfloat16)
        v = qkv[:, 2 * H + h * head_dim:2 * H + (h + 1) * head_dim].astype(jnp.bfloat16)
        s = jnp.dot(q, k.T, preferred_element_type=jnp.float32) * scale
        s = s + mask
        s = s - jnp.max(s, axis=-1, keepdims=True)
        p = jnp.exp(s)
        p = p * pl.reciprocal(jnp.sum(p, axis=-1, keepdims=True), approx=True)
        ctx.append(jnp.dot(p.astype(jnp.bfloat16), v,
                           preferred_element_type=jnp.float32))
    o_ref[0] = jnp.concatenate(ctx, axis=-1).astype(o_ref.dtype)


def attention(qkv, mask, n_heads):
    B, S, threeH = qkv.shape
    H = threeH // 3
    dh = H // n_heads
    kern = functools.partial(_attn_kernel, n_heads=n_heads, head_dim=dh,
                             scale=1.0 / (dh ** 0.5))
    # TODO(synk): for long sequences this should become a flash-style
    # (online-softmax) kernel tiled over queries/keys instead of full (S,S).
    return pl.pallas_call(
        kern,
        out_shape=jax.ShapeDtypeStruct((B, S, H), jnp.float32),
        grid=(B,),
        in_specs=[
            pl.BlockSpec((1, S, threeH), lambda b: (b, 0, 0)),
            pl.BlockSpec((1, 1, S), lambda b: (b, 0, 0)),
        ],
        out_specs=pl.BlockSpec((1, S, H), lambda b: (b, 0, 0)),
        compiler_params=pltpu.CompilerParams(
            dimension_semantics=("parallel",),
            vmem_limit_bytes=_VMEM_LIMIT),
    )(qkv, mask)


# ---------------------------------------------------------------------------
# Parameter construction (deterministic, synthetic weights)
# ---------------------------------------------------------------------------
def init_params(key, *, vocab, max_pos, type_vocab, hidden, n_layers, ffn, n_class):
    keys = iter(jax.random.split(key, 8 * n_layers + 16))

    def dense(shape, dtype=jnp.bfloat16):
        # MXU weight matrices stored in bf16 once; accumulation stays fp32.
        return (jax.random.normal(next(keys), shape, jnp.float32) * 0.02).astype(dtype)

    p = {
        "word_emb": dense((vocab, hidden), jnp.float32),
        "pos_emb": dense((max_pos, hidden), jnp.float32),
        "type_emb": dense((type_vocab, hidden), jnp.float32),
        "emb_ln_g": jnp.ones((hidden,), jnp.float32),
        "emb_ln_b": jnp.zeros((hidden,), jnp.float32),
        "pool_w": dense((hidden, hidden)),
        "pool_b": jnp.zeros((hidden,), jnp.float32),
        "fc_w": dense((hidden, n_class)),
        "fc_b": jnp.zeros((n_class,), jnp.float32),
        "layers": [],
    }
    for _ in range(n_layers):
        p["layers"].append({
            # fused Q|K|V projection
            "w_qkv": dense((hidden, 3 * hidden)),
            "b_qkv": jnp.zeros((3 * hidden,), jnp.float32),
            "wo": dense((hidden, hidden)), "bo": jnp.zeros((hidden,), jnp.float32),
            "ln1_g": jnp.ones((hidden,), jnp.float32),
            "ln1_b": jnp.zeros((hidden,), jnp.float32),
            "w1": dense((hidden, ffn)), "b1": jnp.zeros((ffn,), jnp.float32),
            "w2": dense((ffn, hidden)), "b2": jnp.zeros((hidden,), jnp.float32),
            "ln2_g": jnp.ones((hidden,), jnp.float32),
            "ln2_b": jnp.zeros((hidden,), jnp.float32),
        })
    return p


# ---------------------------------------------------------------------------
# Forward pass (mirrors Bert.forward: BertModel -> dropout -> fc)
# ---------------------------------------------------------------------------
def bert_forward(params, input_ids, token_type_ids, attention_mask, *, n_heads):
    B, S = input_ids.shape
    H = params["word_emb"].shape[1]

    # --- embeddings (table gathers are plain-JAX glue) ------------------------
    pos_ids = jnp.arange(S)
    emb = (params["word_emb"][input_ids]
           + params["pos_emb"][pos_ids][None, :, :]
           + params["type_emb"][token_type_ids])                 # (B, S, H)
    h = layer_norm(emb.reshape(B * S, H),
                   params["emb_ln_g"], params["emb_ln_b"])       # (B*S, H)

    # --- extended additive attention mask, shared across heads ----------------
    ext = (1.0 - attention_mask.astype(jnp.float32))[:, None, :] * -10000.0  # (B,1,S)

    # --- encoder layers --------------------------------------------------------
    for lyr in params["layers"]:
        qkv = linear(h, lyr["w_qkv"], lyr["b_qkv"])              # (B*S, 3H)
        ctx = attention(qkv.reshape(B, S, 3 * H), ext, n_heads)  # (B, S, H)
        h = linear_residual_layer_norm(ctx.reshape(B * S, H), lyr["wo"],
                                       lyr["bo"], h,
                                       lyr["ln1_g"], lyr["ln1_b"])
        ff = linear(h, lyr["w1"], lyr["b1"], activation="gelu")
        h = linear_residual_layer_norm(ff, lyr["w2"], lyr["b2"], h,
                                       lyr["ln2_g"], lyr["ln2_b"])

    # --- pooler (outputs[1]): tanh(dense(first-token hidden state)) -----------
    cls = h.reshape(B, S, H)[:, 0, :]                            # (B, H)
    pooled = linear(cls, params["pool_w"], params["pool_b"], activation="tanh")

    # --- dropout: identity in eval/inference mode ------------------------------
    # TODO(synk): training-mode dropout (random masking) not implemented.

    # --- classifier head --------------------------------------------------------
    logits = linear(pooled, params["fc_w"], params["fc_b"])      # (B, class_num)
    return logits


# ---------------------------------------------------------------------------
# Main
# ---------------------------------------------------------------------------
if __name__ == "__main__":
    # Small, BERT-shaped config.
    B, S = 2, 8
    HIDDEN, N_HEADS, N_LAYERS = 32, 2, 2
    FFN = 4 * HIDDEN
    VOCAB, MAX_POS, TYPE_VOCAB = 100, 16, 2
    CLASS_NUM = 4

    key = jax.random.PRNGKey(0)
    k_ids, k_params = jax.random.split(key)

    input_ids = jax.random.randint(k_ids, (B, S), 0, VOCAB, dtype=jnp.int32)
    token_type_ids = jnp.concatenate(
        [jnp.zeros((B, S // 2), jnp.int32), jnp.ones((B, S // 2), jnp.int32)],
        axis=1)
    attention_mask = jnp.concatenate(
        [jnp.ones((B, S - 2), jnp.int32), jnp.zeros((B, 2), jnp.int32)],
        axis=1)  # last two positions are padding

    params = init_params(
        k_params, vocab=VOCAB, max_pos=MAX_POS, type_vocab=TYPE_VOCAB,
        hidden=HIDDEN, n_layers=N_LAYERS, ffn=FFN, n_class=CLASS_NUM)

    fwd = jax.jit(functools.partial(bert_forward, n_heads=N_HEADS))
    logits = fwd(params, input_ids, token_type_ids, attention_mask)
    jax.block_until_ready(logits)
    assert logits.shape == (B, CLASS_NUM)
    print("KERNEL_OK")
</pallas_src>

<mosaic_0001>
module attributes {stable_mosaic.version = 11 : i64} {
  func.func @_linear_kernel(%arg0: i32, %arg1: i32, %arg2: i32, %arg3: memref<16x32xf32, #tpu.memory_space<vmem>>, %arg4: memref<32x96xbf16, #tpu.memory_space<vmem>>, %arg5: memref<1x96xf32, #tpu.memory_space<vmem>>, %arg6: memref<16x96xf32, #tpu.memory_space<vmem>>, %arg7: memref<16x96xf32, #tpu.memory_space<vmem>>) attributes {dimension_semantics = [#tpu.dimension_semantics<parallel>, #tpu.dimension_semantics<parallel>, #tpu.dimension_semantics<arbitrary>], iteration_bounds = array<i64: 1, 1, 1>, scalar_prefetch = 0 : i64, scratch_operands = 1 : i64, tpu.core_type = #tpu.core_type<tc>, window_params = [{transform_indices = @transform_0, window_bounds = array<i64: 16, 32>}, {transform_indices = @transform_1, window_bounds = array<i64: 32, 96>}, {transform_indices = @transform_2, window_bounds = array<i64: 1, 96>}, {transform_indices = @transform_3, window_bounds = array<i64: 16, 96>}]} {
    %c0_i32 = arith.constant 0 : i32
    %0 = arith.cmpi eq, %arg2, %c0_i32 : i32
    %1 = arith.extui %0 : i1 to i32
    %c0_i32_0 = arith.constant 0 : i32
    %2 = arith.cmpi ne, %1, %c0_i32_0 : i32
    scf.if %2 {
      %cst_10 = arith.constant 0.000000e+00 : f32
      %13 = vector.broadcast %cst_10 : f32 to vector<16x96xf32>
      %c0_11 = arith.constant 0 : index
      %c0_12 = arith.constant 0 : index
      %14 = vector.load %arg7[%c0_11, %c0_12] : memref<16x96xf32, #tpu.memory_space<vmem>>, vector<16x96xf32>
      tpu.vector_store %arg7[%c0_11, %c0_12], %13 {strides = array<i32>} : memref<16x96xf32, #tpu.memory_space<vmem>>, vector<16x96xf32>,
    } else {
    }
    %c0 = arith.constant 0 : index
    %c0_1 = arith.constant 0 : index
    %3 = vector.load %arg7[%c0, %c0_1] : memref<16x96xf32, #tpu.memory_space<vmem>>, vector<16x96xf32>
    %c0_2 = arith.constant 0 : index
    %c0_3 = arith.constant 0 : index
    %4 = vector.load %arg3[%c0_2, %c0_3] : memref<16x32xf32, #tpu.memory_space<vmem>>, vector<16x32xf32>
    %5 = arith.truncf %4 : vector<16x32xf32> to vector<16x32xbf16>
    %c0_4 = arith.constant 0 : index
    %c0_5 = arith.constant 0 : index
    %6 = vector.load %arg4[%c0_4, %c0_5] : memref<32x96xbf16, #tpu.memory_space<vmem>>, vector<32x96xbf16>
    %cst = arith.constant dense<0.000000e+00> : vector<16x96xf32>
    %7 = tpu.matmul %5, %6, %cst {dimension_numbers = #tpu.dot_dimension_numbers<[1], [0], [0], [1], [0, 0, 1, 1], [], []>} : vector<16x32xbf16>, vector<32x96xbf16>, vector<16x96xf32> -> vector<16x96xf32>
    %8 = arith.addf %3, %7 : vector<16x96xf32>
    %c0_6 = arith.constant 0 : index
    %c0_7 = arith.constant 0 : index
    %9 = vector.load %arg7[%c0_6, %c0_7] : memref<16x96xf32, #tpu.memory_space<vmem>>, vector<16x96xf32>
    tpu.vector_store %arg7[%c0_6, %c0_7], %8 {strides = array<i32>} : memref<16x96xf32, #tpu.memory_space<vmem>>, vector<16x96xf32>,
    %c0_i32_8 = arith.constant 0 : i32
    %10 = arith.cmpi eq, %arg2, %c0_i32_8 : i32
    %11 = arith.extui %10 : i1 to i32
    %c0_i32_9 = arith.constant 0 : i32
    %12 = arith.cmpi ne, %11, %c0_i32_9 : i32
    scf.if %12 {
      %c0_10 = arith.constant 0 : index
      %c0_11 = arith.constant 0 : index
      %13 = vector.load %arg7[%c0_10, %c0_11] : memref<16x96xf32, #tpu.memory_space<vmem>>, vector<16x96xf32>
      %c0_12 = arith.constant 0 : index
      %c0_13 = arith.constant 0 : index
      %14 = vector.load %arg5[%c0_12, %c0_13] : memref<1x96xf32, #tpu.memory_space<vmem>>, vector<1x96xf32>
      %15 = vector.broadcast %14 : vector<1x96xf32> to vector<16x96xf32>
      %16 = arith.addf %13, %15 : vector<16x96xf32>
      %c0_14 = arith.constant 0 : index
      %c0_15 = arith.constant 0 : index
      %17 = vector.load %arg6[%c0_14, %c0_15] : memref<16x96xf32, #tpu.memory_space<vmem>>, vector<16x96xf32>
      tpu.vector_store %arg6[%c0_14, %c0_15], %16 {strides = array<i32>} : memref<16x96xf32, #tpu.memory_space<vmem>>, vector<16x96xf32>,
    } else {
    }
    return
  }
  func.func @transform_0(%arg0: i32, %arg1: i32, %arg2: i32) -> (i32, i32) {
    %c0_i32 = arith.constant 0 : i32
    return %arg0, %arg2 : i32, i32
  }
  func.func @transform_1(%arg0: i32, %arg1: i32, %arg2: i32) -> (i32, i32) {
    %c0_i32 = arith.constant 0 : i32
    return %arg2, %arg1 : i32, i32
  }
  func.func @transform_2(%arg0: i32, %arg1: i32, %arg2: i32) -> (i32, i32) {
    %c0_i32 = arith.constant 0 : i32
    %c0_i32_0 = arith.constant 0 : i32
    return %c0_i32, %arg1 : i32, i32
  }
  func.func @transform_3(%arg0: i32, %arg1: i32, %arg2: i32) -> (i32, i32) {
    %c0_i32 = arith.constant 0 : i32
    return %arg0, %arg1 : i32, i32
  }
}

module attributes {stable_mosaic.version = 11 : i64} {
  func.func @_linear_res_ln_kernel(%arg0: i32, %arg1: i32, %arg2: memref<16x32xf32, #tpu.memory_space<vmem>>, %arg3: memref<32x32xbf16, #tpu.memory_space<vmem>>, %arg4: memref<1x32xf32, #tpu.memory_space<vmem>>, %arg5: memref<16x32xf32, #tpu.memory_space<vmem>>, %arg6: memref<1x32xf32, #tpu.memory_space<vmem>>, %arg7: memref<1x32xf32, #tpu.memory_space<vmem>>, %arg8: memref<16x32xf32, #tpu.memory_space<vmem>>, %arg9: memref<16x32xf32, #tpu.memory_space<vmem>>) attributes {dimension_semantics = [#tpu.dimension_semantics<parallel>, #tpu.dimension_semantics<arbitrary>], iteration_bounds = array<i64: 1, 1>, scalar_prefetch = 0 : i64, scratch_operands = 1 : i64, tpu.core_type = #tpu.core_type<tc>, window_params = [{transform_indices = @transform_0, window_bounds = array<i64: 16, 32>}, {transform_indices = @transform_1, window_bounds = array<i64: 32, 32>}, {pipeline_mode = #tpu.pipeline_mode<synchronous>, transform_indices = @transform_2, window_bounds = array<i64: 1, 32>}, {transform_indices = @transform_3, window_bounds = array<i64: 16, 32>}, {pipeline_mode = #tpu.pipeline_mode<synchronous>, transform_indices = @transform_4, window_bounds = array<i64: 1, 32>}, {pipeline_mode = #tpu.pipeline_mode<synchronous>, transform_indices = @transform_5, window_bounds = array<i64: 1, 32>}, {transform_indices = @transform_6, window_bounds = array<i64: 16, 32>}]} {
    %c0_i32 = arith.constant 0 : i32
    %0 = arith.cmpi eq, %arg1, %c0_i32 : i32
    %1 = arith.extui %0 : i1 to i32
    %c0_i32_0 = arith.constant 0 : i32
    %2 = arith.cmpi ne, %1, %c0_i32_0 : i32
    scf.if %2 {
      %cst_10 = arith.constant 0.000000e+00 : f32
      %13 = vector.broadcast %cst_10 : f32 to vector<16x32xf32>
      %c0_11 = arith.constant 0 : index
      %c0_12 = arith.constant 0 : index
      %14 = vector.load %arg9[%c0_11, %c0_12] : memref<16x32xf32, #tpu.memory_space<vmem>>, vector<16x32xf32>
      tpu.vector_store %arg9[%c0_11, %c0_12], %13 {strides = array<i32>} : memref<16x32xf32, #tpu.memory_space<vmem>>, vector<16x32xf32>,
    } else {
    }
    %c0 = arith.constant 0 : index
    %c0_1 = arith.constant 0 : index
    %3 = vector.load %arg9[%c0, %c0_1] : memref<16x32xf32, #tpu.memory_space<vmem>>, vector<16x32xf32>
    %c0_2 = arith.constant 0 : index
    %c0_3 = arith.constant 0 : index
    %4 = vector.load %arg2[%c0_2, %c0_3] : memref<16x32xf32, #tpu.memory_space<vmem>>, vector<16x32xf32>
    %5 = arith.truncf %4 : vector<16x32xf32> to vector<16x32xbf16>
    %c0_4 = arith.constant 0 : index
    %c0_5 = arith.constant 0 : index
    %6 = vector.load %arg3[%c0_4, %c0_5] : memref<32x32xbf16, #tpu.memory_space<vmem>>, vector<32x32xbf16>
    %cst = arith.constant dense<0.000000e+00> : vector<16x32xf32>
    %7 = tpu.matmul %5, %6, %cst {dimension_numbers = #tpu.dot_dimension_numbers<[1], [0], [0], [1], [0, 0, 1, 1], [], []>} : vector<16x32xbf16>, vector<32x32xbf16>, vector<16x32xf32> -> vector<16x32xf32>
    %8 = arith.addf %3, %7 : vector<16x32xf32>
    %c0_6 = arith.constant 0 : index
    %c0_7 = arith.constant 0 : index
    %9 = vector.load %arg9[%c0_6, %c0_7] : memref<16x32xf32, #tpu.memory_space<vmem>>, vector<16x32xf32>
    tpu.vector_store %arg9[%c0_6, %c0_7], %8 {strides = array<i32>} : memref<16x32xf32, #tpu.memory_space<vmem>>, vector<16x32xf32>,
    %c0_i32_8 = arith.constant 0 : i32
    %10 = arith.cmpi eq, %arg1, %c0_i32_8 : i32
    %11 = arith.extui %10 : i1 to i32
    %c0_i32_9 = arith.constant 0 : i32
    %12 = arith.cmpi ne, %11, %c0_i32_9 : i32
    scf.if %12 {
      %c0_10 = arith.constant 0 : index
      %c0_11 = arith.constant 0 : index
      %13 = vector.load %arg9[%c0_10, %c0_11] : memref<16x32xf32, #tpu.memory_space<vmem>>, vector<16x32xf32>
      %c0_12 = arith.constant 0 : index
      %c0_13 = arith.constant 0 : index
      %14 = vector.load %arg4[%c0_12, %c0_13] : memref<1x32xf32, #tpu.memory_space<vmem>>, vector<1x32xf32>
      %15 = vector.broadcast %14 : vector<1x32xf32> to vector<16x32xf32>
      %16 = arith.addf %13, %15 : vector<16x32xf32>
      %c0_14 = arith.constant 0 : index
      %c0_15 = arith.constant 0 : index
      %17 = vector.load %arg5[%c0_14, %c0_15] : memref<16x32xf32, #tpu.memory_space<vmem>>, vector<16x32xf32>
      %18 = arith.addf %16, %17 : vector<16x32xf32>
      %cst_16 = arith.constant dense<0.000000e+00> : vector<16xf32>
      %19 = vector.multi_reduction <add>, %18, %cst_16 [1] : vector<16x32xf32> to vector<16xf32>
      %20 = vector.shape_cast %19 : vector<16xf32> to vector<16x1xf32>
      %cst_17 = arith.constant 3.200000e+01 : f32
      %21 = vector.broadcast %cst_17 : f32 to vector<16x1xf32>
      %22 = arith.divf %20, %21 : vector<16x1xf32>
      %23 = vector.broadcast %22 : vector<16x1xf32> to vector<16x32xf32>
      %24 = arith.subf %18, %23 : vector<16x32xf32>
      %25 = arith.mulf %24, %24 : vector<16x32xf32>
      %cst_18 = arith.constant dense<0.000000e+00> : vector<16xf32>
      %26 = vector.multi_reduction <add>, %25, %cst_18 [1] : vector<16x32xf32> to vector<16xf32>
      %27 = vector.shape_cast %26 : vector<16xf32> to vector<16x1xf32>
      %cst_19 = arith.constant 3.200000e+01 : f32
      %28 = vector.broadcast %cst_19 : f32 to vector<16x1xf32>
      %29 = arith.divf %27, %28 : vector<16x1xf32>
      %30 = vector.broadcast %22 : vector<16x1xf32> to vector<16x32xf32>
      %31 = arith.subf %18, %30 : vector<16x32xf32>
      %cst_20 = arith.constant 9.99999996E-13 : f32
      %32 = vector.broadcast %cst_20 : f32 to vector<16x1xf32>
      %33 = arith.addf %29, %32 : vector<16x1xf32>
      %34 = math.rsqrt %33 : vector<16x1xf32>
      %35 = vector.broadcast %34 : vector<16x1xf32> to vector<16x32xf32>
      %36 = arith.mulf %31, %35 : vector<16x32xf32>
      %c0_21 = arith.constant 0 : index
      %c0_22 = arith.constant 0 : index
      %37 = vector.load %arg6[%c0_21, %c0_22] : memref<1x32xf32, #tpu.memory_space<vmem>>, vector<1x32xf32>
      %38 = vector.broadcast %37 : vector<1x32xf32> to vector<16x32xf32>
      %39 = arith.mulf %36, %38 : vector<16x32xf32>
      %c0_23 = arith.constant 0 : index
      %c0_24 = arith.constant 0 : index
      %40 = vector.load %arg7[%c0_23, %c0_24] : memref<1x32xf32, #tpu.memory_space<vmem>>, vector<1x32xf32>
      %41 = vector.broadcast %40 : vector<1x32xf32> to vector<16x32xf32>
      %42 = arith.addf %39, %41 : vector<16x32xf32>
      %c0_25 = arith.constant 0 : index
      %c0_26 = arith.constant 0 : index
      %43 = vector.load %arg8[%c0_25, %c0_26] : memref<16x32xf32, #tpu.memory_space<vmem>>, vector<16x32xf32>
      tpu.vector_store %arg8[%c0_25, %c0_26], %42 {strides = array<i32>} : memref<16x32xf32, #tpu.memory_space<vmem>>, vector<16x32xf32>,
    } else {
    }
    return
  }
  func.func @transform_0(%arg0: i32, %arg1: i32) -> (i32, i32) {
    %c0_i32 = arith.constant 0 : i32
    return %arg0, %arg1 : i32, i32
  }
  func.func @transform_1(%arg0: i32, %arg1: i32) -> (i32, i32) {
    %c0_i32 = arith.constant 0 : i32
    %c0_i32_0 = arith.constant 0 : i32
    return %arg1, %c0_i32 : i32, i32
  }
  func.func @transform_2(%arg0: i32, %arg1: i32) -> (i32, i32) {
    %c0_i32 = arith.constant 0 : i32
    %c0_i32_0 = arith.constant 0 : i32
    %c0_i32_1 = arith.constant 0 : i32
    return %c0_i32, %c0_i32_0 : i32, i32
  }
  func.func @transform_3(%arg0: i32, %arg1: i32) -> (i32, i32) {
    %c0_i32 = arith.constant 0 : i32
    %c0_i32_0 = arith.constant 0 : i32
    return %arg0, %c0_i32 : i32, i32
  }
  func.func @transform_4(%arg0: i32, %arg1: i32) -> (i32, i32) {
    %c0_i32 = arith.constant 0 : i32
    %c0_i32_0 = arith.constant 0 : i32
    %c0_i32_1 = arith.constant 0 : i32
    return %c0_i32, %c0_i32_0 : i32, i32
  }
  func.func @transform_5(%arg0: i32, %arg1: i32) -> (i32, i32) {
    %c0_i32 = arith.constant 0 : i32
    %c0_i32_0 = arith.constant 0 : i32
    %c0_i32_1 = arith.constant 0 : i32
    return %c0_i32, %c0_i32_0 : i32, i32
  }
  func.func @transform_6(%arg0: i32, %arg1: i32) -> (i32, i32) {
    %c0_i32 = arith.constant 0 : i32
    %c0_i32_0 = arith.constant 0 : i32
    return %arg0, %c0_i32 : i32, i32
  }
}

module attributes {stable_mosaic.version = 11 : i64} {
  func.func @_ln_kernel(%arg0: i32, %arg1: memref<16x32xf32, #tpu.memory_space<vmem>>, %arg2: memref<1x32xf32, #tpu.memory_space<vmem>>, %arg3: memref<1x32xf32, #tpu.memory_space<vmem>>, %arg4: memref<16x32xf32, #tpu.memory_space<vmem>>) attributes {dimension_semantics = [#tpu.dimension_semantics<parallel>], iteration_bounds = array<i64: 1>, scalar_prefetch = 0 : i64, scratch_operands = 0 : i64, tpu.core_type = #tpu.core_type<tc>, window_params = [{transform_indices = @transform_0, window_bounds = array<i64: 16, 32>}, {pipeline_mode = #tpu.pipeline_mode<synchronous>, transform_indices = @transform_1, window_bounds = array<i64: 1, 32>}, {pipeline_mode = #tpu.pipeline_mode<synchronous>, transform_indices = @transform_2, window_bounds = array<i64: 1, 32>}, {transform_indices = @transform_3, window_bounds = array<i64: 16, 32>}]} {
    %c0 = arith.constant 0 : index
    %c0_0 = arith.constant 0 : index
    %0 = vector.load %arg1[%c0, %c0_0] : memref<16x32xf32, #tpu.memory_space<vmem>>, vector<16x32xf32>
    %cst = arith.constant dense<0.000000e+00> : vector<16xf32>
    %1 = vector.multi_reduction <add>, %0, %cst [1] : vector<16x32xf32> to vector<16xf32>
    %2 = vector.shape_cast %1 : vector<16xf32> to vector<16x1xf32>
    %cst_1 = arith.constant 3.200000e+01 : f32
    %3 = vector.broadcast %cst_1 : f32 to vector<16x1xf32>
    %4 = arith.divf %2, %3 : vector<16x1xf32>
    %5 = vector.broadcast %4 : vector<16x1xf32> to vector<16x32xf32>
    %6 = arith.subf %0, %5 : vector<16x32xf32>
    %7 = arith.mulf %6, %6 : vector<16x32xf32>
    %cst_2 = arith.constant dense<0.000000e+00> : vector<16xf32>
    %8 = vector.multi_reduction <add>, %7, %cst_2 [1] : vector<16x32xf32> to vector<16xf32>
    %9 = vector.shape_cast %8 : vector<16xf32> to vector<16x1xf32>
    %cst_3 = arith.constant 3.200000e+01 : f32
    %10 = vector.broadcast %cst_3 : f32 to vector<16x1xf32>
    %11 = arith.divf %9, %10 : vector<16x1xf32>
    %12 = vector.broadcast %4 : vector<16x1xf32> to vector<16x32xf32>
    %13 = arith.subf %0, %12 : vector<16x32xf32>
    %cst_4 = arith.constant 9.99999996E-13 : f32
    %14 = vector.broadcast %cst_4 : f32 to vector<16x1xf32>
    %15 = arith.addf %11, %14 : vector<16x1xf32>
    %16 = math.rsqrt %15 : vector<16x1xf32>
    %17 = vector.broadcast %16 : vector<16x1xf32> to vector<16x32xf32>
    %18 = arith.mulf %13, %17 : vector<16x32xf32>
    %c0_5 = arith.constant 0 : index
    %c0_6 = arith.constant 0 : index
    %19 = vector.load %arg2[%c0_5, %c0_6] : memref<1x32xf32, #tpu.memory_space<vmem>>, vector<1x32xf32>
    %20 = vector.broadcast %19 : vector<1x32xf32> to vector<16x32xf32>
    %21 = arith.mulf %18, %20 : vector<16x32xf32>
    %c0_7 = arith.constant 0 : index
    %c0_8 = arith.constant 0 : index
    %22 = vector.load %arg3[%c0_7, %c0_8] : memref<1x32xf32, #tpu.memory_space<vmem>>, vector<1x32xf32>
    %23 = vector.broadcast %22 : vector<1x32xf32> to vector<16x32xf32>
    %24 = arith.addf %21, %23 : vector<16x32xf32>
    %c0_9 = arith.constant 0 : index
    %c0_10 = arith.constant 0 : index
    %25 = vector.load %arg4[%c0_9, %c0_10] : memref<16x32xf32, #tpu.memory_space<vmem>>, vector<16x32xf32>
    tpu.vector_store %arg4[%c0_9, %c0_10], %24 {strides = array<i32>} : memref<16x32xf32, #tpu.memory_space<vmem>>, vector<16x32xf32>,
    return
  }
  func.func @transform_0(%arg0: i32) -> (i32, i32) {
    %c0_i32 = arith.constant 0 : i32
    %c0_i32_0 = arith.constant 0 : i32
    return %arg0, %c0_i32 : i32, i32
  }
  func.func @transform_1(%arg0: i32) -> (i32, i32) {
    %c0_i32 = arith.constant 0 : i32
    %c0_i32_0 = arith.constant 0 : i32
    %c0_i32_1 = arith.constant 0 : i32
    return %c0_i32, %c0_i32_0 : i32, i32
  }
  func.func @transform_2(%arg0: i32) -> (i32, i32) {
    %c0_i32 = arith.constant 0 : i32
    %c0_i32_0 = arith.constant 0 : i32
    %c0_i32_1 = arith.constant 0 : i32
    return %c0_i32, %c0_i32_0 : i32, i32
  }
  func.func @transform_3(%arg0: i32) -> (i32, i32) {
    %c0_i32 = arith.constant 0 : i32
    %c0_i32_0 = arith.constant 0 : i32
    return %arg0, %c0_i32 : i32, i32
  }
}

module attributes {stable_mosaic.version = 11 : i64} {
  func.func @_attn_kernel(%arg0: i32, %arg1: memref<1x8x96xf32, #tpu.memory_space<vmem>>, %arg2: memref<1x1x8xf32, #tpu.memory_space<vmem>>, %arg3: memref<1x8x32xf32, #tpu.memory_space<vmem>>) attributes {dimension_semantics = [#tpu.dimension_semantics<parallel>], iteration_bounds = array<i64: 2>, scalar_prefetch = 0 : i64, scratch_operands = 0 : i64, tpu.core_type = #tpu.core_type<tc>, window_params = [{transform_indices = @transform_0, window_bounds = array<i64: 1, 8, 96>}, {transform_indices = @transform_1, window_bounds = array<i64: 1, 1, 8>}, {transform_indices = @transform_2, window_bounds = array<i64: 1, 8, 32>}]} {
    %c0 = arith.constant 0 : index
    %c0_0 = arith.constant 0 : index
    %c0_1 = arith.constant 0 : index
    %0 = vector.load %arg1[%c0, %c0_0, %c0_1] : memref<1x8x96xf32, #tpu.memory_space<vmem>>, vector<1x8x96xf32>
    %1 = vector.shape_cast %0 : vector<1x8x96xf32> to vector<8x96xf32>
    %c0_2 = arith.constant 0 : index
    %c0_3 = arith.constant 0 : index
    %c0_4 = arith.constant 0 : index
    %2 = vector.load %arg2[%c0_2, %c0_3, %c0_4] : memref<1x1x8xf32, #tpu.memory_space<vmem>>, vector<1x1x8xf32>
    %3 = vector.shape_cast %2 : vector<1x1x8xf32> to vector<1x8xf32>
    %4 = vector.extract_strided_slice %1 {offsets = [0, 0], sizes = [8, 16], strides = [1, 1]} : vector<8x96xf32> to vector<8x16xf32>
    %5 = arith.truncf %4 : vector<8x16xf32> to vector<8x16xbf16>
    %6 = vector.extract_strided_slice %1 {offsets = [0, 32], sizes = [8, 16], strides = [1, 1]} : vector<8x96xf32> to vector<8x16xf32>
    %7 = arith.truncf %6 : vector<8x16xf32> to vector<8x16xbf16>
    %8 = vector.extract_strided_slice %1 {offsets = [0, 64], sizes = [8, 16], strides = [1, 1]} : vector<8x96xf32> to vector<8x16xf32>
    %9 = arith.truncf %8 : vector<8x16xf32> to vector<8x16xbf16>
    %10 = tpu.transpose %7, [1, 0] : vector<8x16xbf16> -> vector<16x8xbf16>
    %cst = arith.constant dense<0.000000e+00> : vector<8x8xf32>
    %11 = tpu.matmul %5, %10, %cst {dimension_numbers = #tpu.dot_dimension_numbers<[1], [0], [0], [1], [0, 0, 1, 1], [], []>} : vector<8x16xbf16>, vector<16x8xbf16>, vector<8x8xf32> -> vector<8x8xf32>
    %cst_5 = arith.constant 2.500000e-01 : f32
    %12 = vector.broadcast %cst_5 : f32 to vector<8x8xf32>
    %13 = arith.mulf %11, %12 : vector<8x8xf32>
    %14 = vector.broadcast %3 : vector<1x8xf32> to vector<8x8xf32>
    %15 = arith.addf %13, %14 : vector<8x8xf32>
    %cst_6 = arith.constant dense<0xFF800000> : vector<8xf32>
    %16 = vector.multi_reduction <maximumf>, %15, %cst_6 [1] : vector<8x8xf32> to vector<8xf32>
    %17 = vector.shape_cast %16 : vector<8xf32> to vector<8x1xf32>
    %18 = vector.broadcast %17 : vector<8x1xf32> to vector<8x8xf32>
    %19 = arith.subf %15, %18 : vector<8x8xf32>
    %20 = math.exp %19 : vector<8x8xf32>
    %cst_7 = arith.constant dense<0.000000e+00> : vector<8xf32>
    %21 = vector.multi_reduction <add>, %20, %cst_7 [1] : vector<8x8xf32> to vector<8xf32>
    %22 = vector.shape_cast %21 : vector<8xf32> to vector<8x1xf32>
    %23 = tpu.reciprocal %22 {approx = true} : vector<8x1xf32> -> vector<8x1xf32>
    %24 = vector.broadcast %23 : vector<8x1xf32> to vector<8x8xf32>
    %25 = arith.mulf %20, %24 : vector<8x8xf32>
    %26 = arith.truncf %25 : vector<8x8xf32> to vector<8x8xbf16>
    %cst_8 = arith.constant dense<0.000000e+00> : vector<8x16xf32>
    %27 = tpu.matmul %26, %9, %cst_8 {dimension_numbers = #tpu.dot_dimension_numbers<[1], [0], [0], [1], [0, 0, 1, 1], [], []>} : vector<8x8xbf16>, vector<8x16xbf16>, vector<8x16xf32> -> vector<8x16xf32>
    %28 = vector.extract_strided_slice %1 {offsets = [0, 16], sizes = [8, 16], strides = [1, 1]} : vector<8x96xf32> to vector<8x16xf32>
    %29 = arith.truncf %28 : vector<8x16xf32> to vector<8x16xbf16>
    %30 = vector.extract_strided_slice %1 {offsets = [0, 48], sizes = [8, 16], strides = [1, 1]} : vector<8x96xf32> to vector<8x16xf32>
    %31 = arith.truncf %30 : vector<8x16xf32> to vector<8x16xbf16>
    %32 = vector.extract_strided_slice %1 {offsets = [0, 80], sizes = [8, 16], strides = [1, 1]} : vector<8x96xf32> to vector<8x16xf32>
    %33 = arith.truncf %32 : vector<8x16xf32> to vector<8x16xbf16>
    %34 = tpu.transpose %31, [1, 0] : vector<8x16xbf16> -> vector<16x8xbf16>
    %cst_9 = arith.constant dense<0.000000e+00> : vector<8x8xf32>
    %35 = tpu.matmul %29, %34, %cst_9 {dimension_numbers = #tpu.dot_dimension_numbers<[1], [0], [0], [1], [0, 0, 1, 1], [], []>} : vector<8x16xbf16>, vector<16x8xbf16>, vector<8x8xf32> -> vector<8x8xf32>
    %cst_10 = arith.constant 2.500000e-01 : f32
    %36 = vector.broadcast %cst_10 : f32 to vector<8x8xf32>
    %37 = arith.mulf %35, %36 : vector<8x8xf32>
    %38 = vector.broadcast %3 : vector<1x8xf32> to vector<8x8xf32>
    %39 = arith.addf %37, %38 : vector<8x8xf32>
    %cst_11 = arith.constant dense<0xFF800000> : vector<8xf32>
    %40 = vector.multi_reduction <maximumf>, %39, %cst_11 [1] : vector<8x8xf32> to vector<8xf32>
    %41 = vector.shape_cast %40 : vector<8xf32> to vector<8x1xf32>
    %42 = vector.broadcast %41 : vector<8x1xf32> to vector<8x8xf32>
    %43 = arith.subf %39, %42 : vector<8x8xf32>
    %44 = math.exp %43 : vector<8x8xf32>
    %cst_12 = arith.constant dense<0.000000e+00> : vector<8xf32>
    %45 = vector.multi_reduction <add>, %44, %cst_12 [1] : vector<8x8xf32> to vector<8xf32>
    %46 = vector.shape_cast %45 : vector<8xf32> to vector<8x1xf32>
    %47 = tpu.reciprocal %46 {approx = true} : vector<8x1xf32> -> vector<8x1xf32>
    %48 = vector.broadcast %47 : vector<8x1xf32> to vector<8x8xf32>
    %49 = arith.mulf %44, %48 : vector<8x8xf32>
    %50 = arith.truncf %49 : vector<8x8xf32> to vector<8x8xbf16>
    %cst_13 = arith.constant dense<0.000000e+00> : vector<8x16xf32>
    %51 = tpu.matmul %50, %33, %cst_13 {dimension_numbers = #tpu.dot_dimension_numbers<[1], [0], [0], [1], [0, 0, 1, 1], [], []>} : vector<8x8xbf16>, vector<8x16xbf16>, vector<8x16xf32> -> vector<8x16xf32>
    %52 = tpu.concatenate %27, %51 in 1 : vector<8x16xf32>, vector<8x16xf32> -> vector<8x32xf32>
    %c0_14 = arith.constant 0 : index
    %c0_15 = arith.constant 0 : index
    %c0_16 = arith.constant 0 : index
    %53 = vector.load %arg3[%c0_14, %c0_15, %c0_16] : memref<1x8x32xf32, #tpu.memory_space<vmem>>, vector<1x8x32xf32>
    %54 = vector.shape_cast %53 : vector<1x8x32xf32> to vector<8x32xf32>
    %55 = vector.shape_cast %52 : vector<8x32xf32> to vector<1x8x32xf32>
    tpu.vector_store %arg3[%c0_14, %c0_15, %c0_16], %55 {strides = array<i32>} : memref<1x8x32xf32, #tpu.memory_space<vmem>>, vector<1x8x32xf32>,
    return
  }
  func.func @transform_0(%arg0: i32) -> (i32, i32, i32) {
    %c0_i32 = arith.constant 0 : i32
    %c0_i32_0 = arith.constant 0 : i32
    %c0_i32_1 = arith.constant 0 : i32
    return %arg0, %c0_i32, %c0_i32_0 : i32, i32, i32
  }
  func.func @transform_1(%arg0: i32) -> (i32, i32, i32) {
    %c0_i32 = arith.constant 0 : i32
    %c0_i32_0 = arith.constant 0 : i32
    %c0_i32_1 = arith.constant 0 : i32
    return %arg0, %c0_i32, %c0_i32_0 : i32, i32, i32
  }
  func.func @transform_2(%arg0: i32) -> (i32, i32, i32) {
    %c0_i32 = arith.constant 0 : i32
    %c0_i32_0 = arith.constant 0 : i32
    %c0_i32_1 = arith.constant 0 : i32
    return %arg0, %c0_i32, %c0_i32_0 : i32, i32, i32
  }
}

module attributes {stable_mosaic.version = 11 : i64} {
  func.func @_linear_res_ln_kernel(%arg0: i32, %arg1: i32, %arg2: memref<16x128xf32, #tpu.memory_space<vmem>>, %arg3: memref<128x32xbf16, #tpu.memory_space<vmem>>, %arg4: memref<1x32xf32, #tpu.memory_space<vmem>>, %arg5: memref<16x32xf32, #tpu.memory_space<vmem>>, %arg6: memref<1x32xf32, #tpu.memory_space<vmem>>, %arg7: memref<1x32xf32, #tpu.memory_space<vmem>>, %arg8: memref<16x32xf32, #tpu.memory_space<vmem>>, %arg9: memref<16x32xf32, #tpu.memory_space<vmem>>) attributes {dimension_semantics = [#tpu.dimension_semantics<parallel>, #tpu.dimension_semantics<arbitrary>], iteration_bounds = array<i64: 1, 1>, scalar_prefetch = 0 : i64, scratch_operands = 1 : i64, tpu.core_type = #tpu.core_type<tc>, window_params = [{transform_indices = @transform_0, window_bounds = array<i64: 16, 128>}, {transform_indices = @transform_1, window_bounds = array<i64: 128, 32>}, {pipeline_mode = #tpu.pipeline_mode<synchronous>, transform_indices = @transform_2, window_bounds = array<i64: 1, 32>}, {transform_indices = @transform_3, window_bounds = array<i64: 16, 32>}, {pipeline_mode = #tpu.pipeline_mode<synchronous>, transform_indices = @transform_4, window_bounds = array<i64: 1, 32>}, {pipeline_mode = #tpu.pipeline_mode<synchronous>, transform_indices = @transform_5, window_bounds = array<i64: 1, 32>}, {transform_indices = @transform_6, window_bounds = array<i64: 16, 32>}]} {
    %c0_i32 = arith.constant 0 : i32
    %0 = arith.cmpi eq, %arg1, %c0_i32 : i32
    %1 = arith.extui %0 : i1 to i32
    %c0_i32_0 = arith.constant 0 : i32
    %2 = arith.cmpi ne, %1, %c0_i32_0 : i32
    scf.if %2 {
      %cst_10 = arith.constant 0.000000e+00 : f32
      %13 = vector.broadcast %cst_10 : f32 to vector<16x32xf32>
      %c0_11 = arith.constant 0 : index
      %c0_12 = arith.constant 0 : index
      %14 = vector.load %arg9[%c0_11, %c0_12] : memref<16x32xf32, #tpu.memory_space<vmem>>, vector<16x32xf32>
      tpu.vector_store %arg9[%c0_11, %c0_12], %13 {strides = array<i32>} : memref<16x32xf32, #tpu.memory_space<vmem>>, vector<16x32xf32>,
    } else {
    }
    %c0 = arith.constant 0 : index
    %c0_1 = arith.constant 0 : index
    %3 = vector.load %arg9[%c0, %c0_1] : memref<16x32xf32, #tpu.memory_space<vmem>>, vector<16x32xf32>
    %c0_2 = arith.constant 0 : index
    %c0_3 = arith.constant 0 : index
    %4 = vector.load %arg2[%c0_2, %c0_3] : memref<16x128xf32, #tpu.memory_space<vmem>>, vector<16x128xf32>
    %5 = arith.truncf %4 : vector<16x128xf32> to vector<16x128xbf16>
    %c0_4 = arith.constant 0 : index
    %c0_5 = arith.constant 0 : index
    %6 = vector.load %arg3[%c0_4, %c0_5] : memref<128x32xbf16, #tpu.memory_space<vmem>>, vector<128x32xbf16>
    %cst = arith.constant dense<0.000000e+00> : vector<16x32xf32>
    %7 = tpu.matmul %5, %6, %cst {dimension_numbers = #tpu.dot_dimension_numbers<[1], [0], [0], [1], [0, 0, 1, 1], [], []>} : vector<16x128xbf16>, vector<128x32xbf16>, vector<16x32xf32> -> vector<16x32xf32>
    %8 = arith.addf %3, %7 : vector<16x32xf32>
    %c0_6 = arith.constant 0 : index
    %c0_7 = arith.constant 0 : index
    %9 = vector.load %arg9[%c0_6, %c0_7] : memref<16x32xf32, #tpu.memory_space<vmem>>, vector<16x32xf32>
    tpu.vector_store %arg9[%c0_6, %c0_7], %8 {strides = array<i32>} : memref<16x32xf32, #tpu.memory_space<vmem>>, vector<16x32xf32>,
    %c0_i32_8 = arith.constant 0 : i32
    %10 = arith.cmpi eq, %arg1, %c0_i32_8 : i32
    %11 = arith.extui %10 : i1 to i32
    %c0_i32_9 = arith.constant 0 : i32
    %12 = arith.cmpi ne, %11, %c0_i32_9 : i32
    scf.if %12 {
      %c0_10 = arith.constant 0 : index
      %c0_11 = arith.constant 0 : index
      %13 = vector.load %arg9[%c0_10, %c0_11] : memref<16x32xf32, #tpu.memory_space<vmem>>, vector<16x32xf32>
      %c0_12 = arith.constant 0 : index
      %c0_13 = arith.constant 0 : index
      %14 = vector.load %arg4[%c0_12, %c0_13] : memref<1x32xf32, #tpu.memory_space<vmem>>, vector<1x32xf32>
      %15 = vector.broadcast %14 : vector<1x32xf32> to vector<16x32xf32>
      %16 = arith.addf %13, %15 : vector<16x32xf32>
      %c0_14 = arith.constant 0 : index
      %c0_15 = arith.constant 0 : index
      %17 = vector.load %arg5[%c0_14, %c0_15] : memref<16x32xf32, #tpu.memory_space<vmem>>, vector<16x32xf32>
      %18 = arith.addf %16, %17 : vector<16x32xf32>
      %cst_16 = arith.constant dense<0.000000e+00> : vector<16xf32>
      %19 = vector.multi_reduction <add>, %18, %cst_16 [1] : vector<16x32xf32> to vector<16xf32>
      %20 = vector.shape_cast %19 : vector<16xf32> to vector<16x1xf32>
      %cst_17 = arith.constant 3.200000e+01 : f32
      %21 = vector.broadcast %cst_17 : f32 to vector<16x1xf32>
      %22 = arith.divf %20, %21 : vector<16x1xf32>
      %23 = vector.broadcast %22 : vector<16x1xf32> to vector<16x32xf32>
      %24 = arith.subf %18, %23 : vector<16x32xf32>
      %25 = arith.mulf %24, %24 : vector<16x32xf32>
      %cst_18 = arith.constant dense<0.000000e+00> : vector<16xf32>
      %26 = vector.multi_reduction <add>, %25, %cst_18 [1] : vector<16x32xf32> to vector<16xf32>
      %27 = vector.shape_cast %26 : vector<16xf32> to vector<16x1xf32>
      %cst_19 = arith.constant 3.200000e+01 : f32
      %28 = vector.broadcast %cst_19 : f32 to vector<16x1xf32>
      %29 = arith.divf %27, %28 : vector<16x1xf32>
      %30 = vector.broadcast %22 : vector<16x1xf32> to vector<16x32xf32>
      %31 = arith.subf %18, %30 : vector<16x32xf32>
      %cst_20 = arith.constant 9.99999996E-13 : f32
      %32 = vector.broadcast %cst_20 : f32 to vector<16x1xf32>
      %33 = arith.addf %29, %32 : vector<16x1xf32>
      %34 = math.rsqrt %33 : vector<16x1xf32>
      %35 = vector.broadcast %34 : vector<16x1xf32> to vector<16x32xf32>
      %36 = arith.mulf %31, %35 : vector<16x32xf32>
      %c0_21 = arith.constant 0 : index
      %c0_22 = arith.constant 0 : index
      %37 = vector.load %arg6[%c0_21, %c0_22] : memref<1x32xf32, #tpu.memory_space<vmem>>, vector<1x32xf32>
      %38 = vector.broadcast %37 : vector<1x32xf32> to vector<16x32xf32>
      %39 = arith.mulf %36, %38 : vector<16x32xf32>
      %c0_23 = arith.constant 0 : index
      %c0_24 = arith.constant 0 : index
      %40 = vector.load %arg7[%c0_23, %c0_24] : memref<1x32xf32, #tpu.memory_space<vmem>>, vector<1x32xf32>
      %41 = vector.broadcast %40 : vector<1x32xf32> to vector<16x32xf32>
      %42 = arith.addf %39, %41 : vector<16x32xf32>
      %c0_25 = arith.constant 0 : index
      %c0_26 = arith.constant 0 : index
      %43 = vector.load %arg8[%c0_25, %c0_26] : memref<16x32xf32, #tpu.memory_space<vmem>>, vector<16x32xf32>
      tpu.vector_store %arg8[%c0_25, %c0_26], %42 {strides = array<i32>} : memref<16x32xf32, #tpu.memory_space<vmem>>, vector<16x32xf32>,
    } else {
    }
    return
  }
  func.func @transform_0(%arg0: i32, %arg1: i32) -> (i32, i32) {
    %c0_i32 = arith.constant 0 : i32
    return %arg0, %arg1 : i32, i32
  }
  func.func @transform_1(%arg0: i32, %arg1: i32) -> (i32, i32) {
    %c0_i32 = arith.constant 0 : i32
    %c0_i32_0 = arith.constant 0 : i32
    return %arg1, %c0_i32 : i32, i32
  }
  func.func @transform_2(%arg0: i32, %arg1: i32) -> (i32, i32) {
    %c0_i32 = arith.constant 0 : i32
    %c0_i32_0 = arith.constant 0 : i32
    %c0_i32_1 = arith.constant 0 : i32
    return %c0_i32, %c0_i32_0 : i32, i32
  }
  func.func @transform_3(%arg0: i32, %arg1: i32) -> (i32, i32) {
    %c0_i32 = arith.constant 0 : i32
    %c0_i32_0 = arith.constant 0 : i32
    return %arg0, %c0_i32 : i32, i32
  }
  func.func @transform_4(%arg0: i32, %arg1: i32) -> (i32, i32) {
    %c0_i32 = arith.constant 0 : i32
    %c0_i32_0 = arith.constant 0 : i32
    %c0_i32_1 = arith.constant 0 : i32
    return %c0_i32, %c0_i32_0 : i32, i32
  }
  func.func @transform_5(%arg0: i32, %arg1: i32) -> (i32, i32) {
    %c0_i32 = arith.constant 0 : i32
    %c0_i32_0 = arith.constant 0 : i32
    %c0_i32_1 = arith.constant 0 : i32
    return %c0_i32, %c0_i32_0 : i32, i32
  }
  func.func @transform_6(%arg0: i32, %arg1: i32) -> (i32, i32) {
    %c0_i32 = arith.constant 0 : i32
    %c0_i32_0 = arith.constant 0 : i32
    return %arg0, %c0_i32 : i32, i32
  }
}

module attributes {stable_mosaic.version = 11 : i64} {
  func.func @_linear_kernel(%arg0: i32, %arg1: i32, %arg2: i32, %arg3: memref<16x32xf32, #tpu.memory_space<vmem>>, %arg4: memref<32x128xbf16, #tpu.memory_space<vmem>>, %arg5: memref<1x128xf32, #tpu.memory_space<vmem>>, %arg6: memref<16x128xf32, #tpu.memory_space<vmem>>, %arg7: memref<16x128xf32, #tpu.memory_space<vmem>>) attributes {dimension_semantics = [#tpu.dimension_semantics<parallel>, #tpu.dimension_semantics<parallel>, #tpu.dimension_semantics<arbitrary>], iteration_bounds = array<i64: 1, 1, 1>, scalar_prefetch = 0 : i64, scratch_operands = 1 : i64, tpu.core_type = #tpu.core_type<tc>, window_params = [{transform_indices = @transform_0, window_bounds = array<i64: 16, 32>}, {transform_indices = @transform_1, window_bounds = array<i64: 32, 128>}, {transform_indices = @transform_2, window_bounds = array<i64: 1, 128>}, {transform_indices = @transform_3, window_bounds = array<i64: 16, 128>}]} {
    %c0_i32 = arith.constant 0 : i32
    %0 = arith.cmpi eq, %arg2, %c0_i32 : i32
    %1 = arith.extui %0 : i1 to i32
    %c0_i32_0 = arith.constant 0 : i32
    %2 = arith.cmpi ne, %1, %c0_i32_0 : i32
    scf.if %2 {
      %cst_10 = arith.constant 0.000000e+00 : f32
      %13 = vector.broadcast %cst_10 : f32 to vector<16x128xf32>
      %c0_11 = arith.constant 0 : index
      %c0_12 = arith.constant 0 : index
      %14 = vector.load %arg7[%c0_11, %c0_12] : memref<16x128xf32, #tpu.memory_space<vmem>>, vector<16x128xf32>
      tpu.vector_store %arg7[%c0_11, %c0_12], %13 {strides = array<i32>} : memref<16x128xf32, #tpu.memory_space<vmem>>, vector<16x128xf32>,
    } else {
    }
    %c0 = arith.constant 0 : index
    %c0_1 = arith.constant 0 : index
    %3 = vector.load %arg7[%c0, %c0_1] : memref<16x128xf32, #tpu.memory_space<vmem>>, vector<16x128xf32>
    %c0_2 = arith.constant 0 : index
    %c0_3 = arith.constant 0 : index
    %4 = vector.load %arg3[%c0_2, %c0_3] : memref<16x32xf32, #tpu.memory_space<vmem>>, vector<16x32xf32>
    %5 = arith.truncf %4 : vector<16x32xf32> to vector<16x32xbf16>
    %c0_4 = arith.constant 0 : index
    %c0_5 = arith.constant 0 : index
    %6 = vector.load %arg4[%c0_4, %c0_5] : memref<32x128xbf16, #tpu.memory_space<vmem>>, vector<32x128xbf16>
    %cst = arith.constant dense<0.000000e+00> : vector<16x128xf32>
    %7 = tpu.matmul %5, %6, %cst {dimension_numbers = #tpu.dot_dimension_numbers<[1], [0], [0], [1], [0, 0, 1, 1], [], []>} : vector<16x32xbf16>, vector<32x128xbf16>, vector<16x128xf32> -> vector<16x128xf32>
    %8 = arith.addf %3, %7 : vector<16x128xf32>
    %c0_6 = arith.constant 0 : index
    %c0_7 = arith.constant 0 : index
    %9 = vector.load %arg7[%c0_6, %c0_7] : memref<16x128xf32, #tpu.memory_space<vmem>>, vector<16x128xf32>
    tpu.vector_store %arg7[%c0_6, %c0_7], %8 {strides = array<i32>} : memref<16x128xf32, #tpu.memory_space<vmem>>, vector<16x128xf32>,
    %c0_i32_8 = arith.constant 0 : i32
    %10 = arith.cmpi eq, %arg2, %c0_i32_8 : i32
    %11 = arith.extui %10 : i1 to i32
    %c0_i32_9 = arith.constant 0 : i32
    %12 = arith.cmpi ne, %11, %c0_i32_9 : i32
    scf.if %12 {
      %c0_10 = arith.constant 0 : index
      %c0_11 = arith.constant 0 : index
      %13 = vector.load %arg7[%c0_10, %c0_11] : memref<16x128xf32, #tpu.memory_space<vmem>>, vector<16x128xf32>
      %c0_12 = arith.constant 0 : index
      %c0_13 = arith.constant 0 : index
      %14 = vector.load %arg5[%c0_12, %c0_13] : memref<1x128xf32, #tpu.memory_space<vmem>>, vector<1x128xf32>
      %15 = vector.broadcast %14 : vector<1x128xf32> to vector<16x128xf32>
      %16 = arith.addf %13, %15 : vector<16x128xf32>
      %17 = arith.mulf %16, %16 : vector<16x128xf32>
      %18 = arith.mulf %16, %17 : vector<16x128xf32>
      %cst_14 = arith.constant 4.471500e-02 : f32
      %19 = vector.broadcast %cst_14 : f32 to vector<16x128xf32>
      %20 = arith.mulf %19, %18 : vector<16x128xf32>
      %21 = arith.addf %16, %20 : vector<16x128xf32>
      %cst_15 = arith.constant 0.797884583 : f32
      %22 = vector.broadcast %cst_15 : f32 to vector<16x128xf32>
      %23 = arith.mulf %22, %21 : vector<16x128xf32>
      %24 = math.tanh %23 : vector<16x128xf32>
      %cst_16 = arith.constant 1.000000e+00 : f32
      %25 = vector.broadcast %cst_16 : f32 to vector<16x128xf32>
      %26 = arith.addf %25, %24 : vector<16x128xf32>
      %cst_17 = arith.constant 5.000000e-01 : f32
      %27 = vector.broadcast %cst_17 : f32 to vector<16x128xf32>
      %28 = arith.mulf %27, %26 : vector<16x128xf32>
      %29 = arith.mulf %16, %28 : vector<16x128xf32>
      %c0_18 = arith.constant 0 : index
      %c0_19 = arith.constant 0 : index
      %30 = vector.load %arg6[%c0_18, %c0_19] : memref<16x128xf32, #tpu.memory_space<vmem>>, vector<16x128xf32>
      tpu.vector_store %arg6[%c0_18, %c0_19], %29 {strides = array<i32>} : memref<16x128xf32, #tpu.memory_space<vmem>>, vector<16x128xf32>,
    } else {
    }
    return
  }
  func.func @transform_0(%arg0: i32, %arg1: i32, %arg2: i32) -> (i32, i32) {
    %c0_i32 = arith.constant 0 : i32
    return %arg0, %arg2 : i32, i32
  }
  func.func @transform_1(%arg0: i32, %arg1: i32, %arg2: i32) -> (i32, i32) {
    %c0_i32 = arith.constant 0 : i32
    return %arg2, %arg1 : i32, i32
  }
  func.func @transform_2(%arg0: i32, %arg1: i32, %arg2: i32) -> (i32, i32) {
    %c0_i32 = arith.constant 0 : i32
    %c0_i32_0 = arith.constant 0 : i32
    return %c0_i32, %arg1 : i32, i32
  }
  func.func @transform_3(%arg0: i32, %arg1: i32, %arg2: i32) -> (i32, i32) {
    %c0_i32 = arith.constant 0 : i32
    return %arg0, %arg1 : i32, i32
  }
}

module attributes {stable_mosaic.version = 11 : i64} {
  func.func @_linear_kernel(%arg0: i32, %arg1: i32, %arg2: i32, %arg3: memref<2x32xf32, #tpu.memory_space<vmem>>, %arg4: memref<32x32xbf16, #tpu.memory_space<vmem>>, %arg5: memref<1x32xf32, #tpu.memory_space<vmem>>, %arg6: memref<2x32xf32, #tpu.memory_space<vmem>>, %arg7: memref<2x32xf32, #tpu.memory_space<vmem>>) attributes {dimension_semantics = [#tpu.dimension_semantics<parallel>, #tpu.dimension_semantics<parallel>, #tpu.dimension_semantics<arbitrary>], iteration_bounds = array<i64: 1, 1, 1>, scalar_prefetch = 0 : i64, scratch_operands = 1 : i64, tpu.core_type = #tpu.core_type<tc>, window_params = [{transform_indices = @transform_0, window_bounds = array<i64: 2, 32>}, {transform_indices = @transform_1, window_bounds = array<i64: 32, 32>}, {transform_indices = @transform_2, window_bounds = array<i64: 1, 32>}, {transform_indices = @transform_3, window_bounds = array<i64: 2, 32>}]} {
    %c0_i32 = arith.constant 0 : i32
    %0 = arith.cmpi eq, %arg2, %c0_i32 : i32
    %1 = arith.extui %0 : i1 to i32
    %c0_i32_0 = arith.constant 0 : i32
    %2 = arith.cmpi ne, %1, %c0_i32_0 : i32
    scf.if %2 {
      %cst_10 = arith.constant 0.000000e+00 : f32
      %13 = vector.broadcast %cst_10 : f32 to vector<2x32xf32>
      %c0_11 = arith.constant 0 : index
      %c0_12 = arith.constant 0 : index
      %14 = vector.load %arg7[%c0_11, %c0_12] : memref<2x32xf32, #tpu.memory_space<vmem>>, vector<2x32xf32>
      tpu.vector_store %arg7[%c0_11, %c0_12], %13 {strides = array<i32>} : memref<2x32xf32, #tpu.memory_space<vmem>>, vector<2x32xf32>,
    } else {
    }
    %c0 = arith.constant 0 : index
    %c0_1 = arith.constant 0 : index
    %3 = vector.load %arg7[%c0, %c0_1] : memref<2x32xf32, #tpu.memory_space<vmem>>, vector<2x32xf32>
    %c0_2 = arith.constant 0 : index
    %c0_3 = arith.constant 0 : index
    %4 = vector.load %arg3[%c0_2, %c0_3] : memref<2x32xf32, #tpu.memory_space<vmem>>, vector<2x32xf32>
    %5 = arith.truncf %4 : vector<2x32xf32> to vector<2x32xbf16>
    %c0_4 = arith.constant 0 : index
    %c0_5 = arith.constant 0 : index
    %6 = vector.load %arg4[%c0_4, %c0_5] : memref<32x32xbf16, #tpu.memory_space<vmem>>, vector<32x32xbf16>
    %cst = arith.constant dense<0.000000e+00> : vector<2x32xf32>
    %7 = tpu.matmul %5, %6, %cst {dimension_numbers = #tpu.dot_dimension_numbers<[1], [0], [0], [1], [0, 0, 1, 1], [], []>} : vector<2x32xbf16>, vector<32x32xbf16>, vector<2x32xf32> -> vector<2x32xf32>
    %8 = arith.addf %3, %7 : vector<2x32xf32>
    %c0_6 = arith.constant 0 : index
    %c0_7 = arith.constant 0 : index
    %9 = vector.load %arg7[%c0_6, %c0_7] : memref<2x32xf32, #tpu.memory_space<vmem>>, vector<2x32xf32>
    tpu.vector_store %arg7[%c0_6, %c0_7], %8 {strides = array<i32>} : memref<2x32xf32, #tpu.memory_space<vmem>>, vector<2x32xf32>,
    %c0_i32_8 = arith.constant 0 : i32
    %10 = arith.cmpi eq, %arg2, %c0_i32_8 : i32
    %11 = arith.extui %10 : i1 to i32
    %c0_i32_9 = arith.constant 0 : i32
    %12 = arith.cmpi ne, %11, %c0_i32_9 : i32
    scf.if %12 {
      %c0_10 = arith.constant 0 : index
      %c0_11 = arith.constant 0 : index
      %13 = vector.load %arg7[%c0_10, %c0_11] : memref<2x32xf32, #tpu.memory_space<vmem>>, vector<2x32xf32>
      %c0_12 = arith.constant 0 : index
      %c0_13 = arith.constant 0 : index
      %14 = vector.load %arg5[%c0_12, %c0_13] : memref<1x32xf32, #tpu.memory_space<vmem>>, vector<1x32xf32>
      %15 = vector.broadcast %14 : vector<1x32xf32> to vector<2x32xf32>
      %16 = arith.addf %13, %15 : vector<2x32xf32>
      %17 = math.tanh %16 : vector<2x32xf32>
      %c0_14 = arith.constant 0 : index
      %c0_15 = arith.constant 0 : index
      %18 = vector.load %arg6[%c0_14, %c0_15] : memref<2x32xf32, #tpu.memory_space<vmem>>, vector<2x32xf32>
      tpu.vector_store %arg6[%c0_14, %c0_15], %17 {strides = array<i32>} : memref<2x32xf32, #tpu.memory_space<vmem>>, vector<2x32xf32>,
    } else {
    }
    return
  }
  func.func @transform_0(%arg0: i32, %arg1: i32, %arg2: i32) -> (i32, i32) {
    %c0_i32 = arith.constant 0 : i32
    return %arg0, %arg2 : i32, i32
  }
  func.func @transform_1(%arg0: i32, %arg1: i32, %arg2: i32) -> (i32, i32) {
    %c0_i32 = arith.constant 0 : i32
    return %arg2, %arg1 : i32, i32
  }
  func.func @transform_2(%arg0: i32, %arg1: i32, %arg2: i32) -> (i32, i32) {
    %c0_i32 = arith.constant 0 : i32
    %c0_i32_0 = arith.constant 0 : i32
    return %c0_i32, %arg1 : i32, i32
  }
  func.func @transform_3(%arg0: i32, %arg1: i32, %arg2: i32) -> (i32, i32) {
    %c0_i32 = arith.constant 0 : i32
    return %arg0, %arg1 : i32, i32
  }
}

module attributes {stable_mosaic.version = 11 : i64} {
  func.func @_linear_kernel(%arg0: i32, %arg1: i32, %arg2: i32, %arg3: memref<2x32xf32, #tpu.memory_space<vmem>>, %arg4: memref<32x4xbf16, #tpu.memory_space<vmem>>, %arg5: memref<1x4xf32, #tpu.memory_space<vmem>>, %arg6: memref<2x4xf32, #tpu.memory_space<vmem>>, %arg7: memref<2x4xf32, #tpu.memory_space<vmem>>) attributes {dimension_semantics = [#tpu.dimension_semantics<parallel>, #tpu.dimension_semantics<parallel>, #tpu.dimension_semantics<arbitrary>], iteration_bounds = array<i64: 1, 1, 1>, scalar_prefetch = 0 : i64, scratch_operands = 1 : i64, tpu.core_type = #tpu.core_type<tc>, window_params = [{transform_indices = @transform_0, window_bounds = array<i64: 2, 32>}, {transform_indices = @transform_1, window_bounds = array<i64: 32, 4>}, {transform_indices = @transform_2, window_bounds = array<i64: 1, 4>}, {transform_indices = @transform_3, window_bounds = array<i64: 2, 4>}]} {
    %c0_i32 = arith.constant 0 : i32
    %0 = arith.cmpi eq, %arg2, %c0_i32 : i32
    %1 = arith.extui %0 : i1 to i32
    %c0_i32_0 = arith.constant 0 : i32
    %2 = arith.cmpi ne, %1, %c0_i32_0 : i32
    scf.if %2 {
      %cst_10 = arith.constant 0.000000e+00 : f32
      %13 = vector.broadcast %cst_10 : f32 to vector<2x4xf32>
      %c0_11 = arith.constant 0 : index
      %c0_12 = arith.constant 0 : index
      %14 = vector.load %arg7[%c0_11, %c0_12] : memref<2x4xf32, #tpu.memory_space<vmem>>, vector<2x4xf32>
      tpu.vector_store %arg7[%c0_11, %c0_12], %13 {strides = array<i32>} : memref<2x4xf32, #tpu.memory_space<vmem>>, vector<2x4xf32>,
    } else {
    }
    %c0 = arith.constant 0 : index
    %c0_1 = arith.constant 0 : index
    %3 = vector.load %arg7[%c0, %c0_1] : memref<2x4xf32, #tpu.memory_space<vmem>>, vector<2x4xf32>
    %c0_2 = arith.constant 0 : index
    %c0_3 = arith.constant 0 : index
    %4 = vector.load %arg3[%c0_2, %c0_3] : memref<2x32xf32, #tpu.memory_space<vmem>>, vector<2x32xf32>
    %5 = arith.truncf %4 : vector<2x32xf32> to vector<2x32xbf16>
    %c0_4 = arith.constant 0 : index
    %c0_5 = arith.constant 0 : index
    %6 = vector.load %arg4[%c0_4, %c0_5] : memref<32x4xbf16, #tpu.memory_space<vmem>>, vector<32x4xbf16>
    %cst = arith.constant dense<0.000000e+00> : vector<2x4xf32>
    %7 = tpu.matmul %5, %6, %cst {dimension_numbers = #tpu.dot_dimension_numbers<[1], [0], [0], [1], [0, 0, 1, 1], [], []>} : vector<2x32xbf16>, vector<32x4xbf16>, vector<2x4xf32> -> vector<2x4xf32>
    %8 = arith.addf %3, %7 : vector<2x4xf32>
    %c0_6 = arith.constant 0 : index
    %c0_7 = arith.constant 0 : index
    %9 = vector.load %arg7[%c0_6, %c0_7] : memref<2x4xf32, #tpu.memory_space<vmem>>, vector<2x4xf32>
    tpu.vector_store %arg7[%c0_6, %c0_7], %8 {strides = array<i32>} : memref<2x4xf32, #tpu.memory_space<vmem>>, vector<2x4xf32>,
    %c0_i32_8 = arith.constant 0 : i32
    %10 = arith.cmpi eq, %arg2, %c0_i32_8 : i32
    %11 = arith.extui %10 : i1 to i32
    %c0_i32_9 = arith.constant 0 : i32
    %12 = arith.cmpi ne, %11, %c0_i32_9 : i32
    scf.if %12 {
      %c0_10 = arith.constant 0 : index
      %c0_11 = arith.constant 0 : index
      %13 = vector.load %arg7[%c0_10, %c0_11] : memref<2x4xf32, #tpu.memory_space<vmem>>, vector<2x4xf32>
      %c0_12 = arith.constant 0 : index
      %c0_13 = arith.constant 0 : index
      %14 = vector.load %arg5[%c0_12, %c0_13] : memref<1x4xf32, #tpu.memory_space<vmem>>, vector<1x4xf32>
      %15 = vector.broadcast %14 : vector<1x4xf32> to vector<2x4xf32>
      %16 = arith.addf %13, %15 : vector<2x4xf32>
      %c0_14 = arith.constant 0 : index
      %c0_15 = arith.constant 0 : index
      %17 = vector.load %arg6[%c0_14, %c0_15] : memref<2x4xf32, #tpu.memory_space<vmem>>, vector<2x4xf32>
      tpu.vector_store %arg6[%c0_14, %c0_15], %16 {strides = array<i32>} : memref<2x4xf32, #tpu.memory_space<vmem>>, vector<2x4xf32>,
    } else {
    }
    return
  }
  func.func @transform_0(%arg0: i32, %arg1: i32, %arg2: i32) -> (i32, i32) {
    %c0_i32 = arith.constant 0 : i32
    return %arg0, %arg2 : i32, i32
  }
  func.func @transform_1(%arg0: i32, %arg1: i32, %arg2: i32) -> (i32, i32) {
    %c0_i32 = arith.constant 0 : i32
    return %arg2, %arg1 : i32, i32
  }
  func.func @transform_2(%arg0: i32, %arg1: i32, %arg2: i32) -> (i32, i32) {
    %c0_i32 = arith.constant 0 : i32
    %c0_i32_0 = arith.constant 0 : i32
    return %c0_i32, %arg1 : i32, i32
  }
  func.func @transform_3(%arg0: i32, %arg1: i32, %arg2: i32) -> (i32, i32) {
    %c0_i32 = arith.constant 0 : i32
    return %arg0, %arg1 : i32, i32
  }
}

</mosaic_0001>

<bundles_post_ra>
// kernel: bert_forward.14
= control target key start
LH: loop header
LB: loop body
LE: loop exit
PB: predicated region body
PF: predicated region fallthrough
CT: control target
= control target key end

     0   :  { %vm19_vm0 = vcmask 785408   ;;  %v132_v0 = vmov 0.0   ;;  %vm133_vm1 = vmmov 0   ;;  %vm43_vm2 = vcmask 261120   ;;  %s181_s1 = inlined_call_operand.vmem [shape: bf16[32,96], index: 1, kind: input, shape index: {}]   ;;  %s182_s0 = inlined_call_operand.vmem [shape: f32[16,32], index: 0, kind: input, shape index: {}]   ;;  %s183_s2 = inlined_call_operand.vmem [shape: f32[1,96], index: 2, kind: input, shape index: {}]   ;;  %s184_s3 = inlined_call_operand.vmem [shape: f32[16,96], index: 3, kind: output, shape index: {}]  }
   0x1   :  { %120 = vmatprep.subr.bf16.mxu0 %v132_v0  ;;  %v130_v1 = vld [vmem:[%s181_s1] sm:$0xff]   ;;  %124 = vmatprep.mubr.msk.bf16.mxu0 %vm133_vm1, %v132_v0  ;;  %20 = vst.msk [vmem:[#allocation2] sm:$0xff] %vm19_vm0, %v132_v0  ;;  %21 = vst.msk [vmem:[#allocation2 + $0x8] sm:$0xff] %vm19_vm0, %v132_v0  ;;  %v131_v2 = vld [vmem:[%s181_s1 + $0x8] sm:$0xff]  }
   0x2   :  { %121 = vmatpush3.bf16.msra.mxu0 %v130_v1  ;;  %v24_v3 = vld [vmem:[%s182_s0] sm:$0xff]  ;;  %v25_v4 = vld [vmem:[%s182_s0 + $0x8] sm:$0xff] }
   0x3   :  { %122 = vmatprep.subr.bf16.mxu0 %v132_v0  ;;  %v26_v5 = vpack.c.bf16 %v25_v4, %v24_v3  ;;  %v116_v14 = vld [vmem:[%s183_s2] ss:$0 sm:$0xff] }
   0x6   :  { %123 = vmatpush3.bf16.msra.mxu0 %v131_v2 }
   0x8   :  { %v22_v6 = vld [vmem:[#allocation2] sm:$0xff]  ;;  %v23_v8 = vld [vmem:[#allocation2 + $0x8] sm:$0xff] }
   0x9   :  { %125 = vmatmul.mubr.msk.bf16.vlgmr.msra.gmra.mrb[0].mxu0 %vm43_vm2, %v26_v5 }
  0xdc   :  { %v81_v7 = vpop.f32.mrb[0].mxu0 }
  0xdd   :  { %v88_v9 = vadd.f32 %v81_v7, %v22_v6  ;;  %v126_v10 = vpop.f32.mrb[1].mxu0 }
  0xde   :  { %v84_v11 = vpop.f32.mrb[2].mxu0 }
  0xdf   :  { %91 = vst.msk [vmem:[#allocation2] sm:$0xff] %vm19_vm0, %v88_v9  ;;  %v89_v12 = vadd.f32 %v84_v11, %v23_v8  ;;  %v127_v13 = vpop.f32.mrb[3].mxu0 }
  0xe1   :  { %92 = vst.msk [vmem:[#allocation2 + $0x8] sm:$0xff] %vm19_vm0, %v89_v12 }
  0xe6   :  { %v96_v15 = vld [vmem:[#allocation2] sm:$0xff] }
  0xe7   :  { %v105_v16 = vadd.f32 %v116_v14, %v96_v15 }
  0xe8   :  { %v97_v17 = vld [vmem:[#allocation2 + $0x8] sm:$0xff] }
  0xe9   :  { %107 = vst.msk [vmem:[%s184_s3] sm:$0xff] %vm19_vm0, %v105_v16  ;;  %v106_v18 = vadd.f32 %v116_v14, %v97_v17 }
  0xeb   :  { %108 = vst.msk [vmem:[%s184_s3 + $0x8] sm:$0xff] %vm19_vm0, %v106_v18 }

// kernel: bert_forward.16
= control target key start
LH: loop header
LB: loop body
LE: loop exit
PB: predicated region body
PF: predicated region fallthrough
CT: control target
= control target key end

     0   :  { %vm28_vm0 = vcmask 261120   ;;  %v195_v0 = vmov 0.0   ;;  %vm196_vm1 = vmmov 0   ;;  %s276_s1 = inlined_call_operand.vmem [shape: bf16[32,32], index: 1, kind: input, shape index: {}]   ;;  %s277_s0 = inlined_call_operand.vmem [shape: f32[16,32], index: 0, kind: input, shape index: {}]   ;;  %s278_s2 = inlined_call_operand.vmem [shape: f32[1,32], index: 2, kind: input, shape index: {}]   ;;  %s279_s3 = inlined_call_operand.vmem [shape: f32[16,32], index: 3, kind: input, shape index: {}]   ;;  %s280_s4 = inlined_call_operand.vmem [shape: f32[1,32], index: 4, kind: input, shape index: {}]   ;;  %s281_s5 = inlined_call_operand.vmem [shape: f32[1,32], index: 5, kind: input, shape index: {}]   ;;  %s282_s6 = inlined_call_operand.vmem [shape: f32[16,32], index: 6, kind: output, shape index: {}]  }
   0x1   :  { %179 = vmatprep.subr.bf16.mxu0 %v195_v0  ;;  %v189_v1 = vld [vmem:[%s276_s1] sm:$0xff]   ;;  %183 = vmatprep.mubr.msk.bf16.mxu0 %vm196_vm1, %v195_v0  ;;  %29 = vst.msk [vmem:[#allocation2] sm:$0xff] %vm28_vm0, %v195_v0  ;;  %30 = vst.msk [vmem:[#allocation2 + $0x8] sm:$0xff] %vm28_vm0, %v195_v0  ;;  %v190_v2 = vld [vmem:[%s276_s1 + $0x8] sm:$0xff]  }
   0x2   :  { %180 = vmatpush3.bf16.msra.mxu0 %v189_v1  ;;  %v33_v3 = vld [vmem:[%s277_s0] sm:$0xff]  ;;  %v34_v4 = vld [vmem:[%s277_s0 + $0x8] sm:$0xff] }
   0x3   :  { %181 = vmatprep.subr.bf16.mxu0 %v195_v0  ;;  %v35_v5 = vpack.c.bf16 %v34_v4, %v33_v3  ;;  %v173_v14 = vld [vmem:[%s278_s2] ss:$0 sm:$0xff]  ;;  %v116_v19 = vld [vmem:[%s279_s3 + $0x8] sm:$0xff] }
   0x4   :  { %v115_v16 = vld [vmem:[%s279_s3] sm:$0xff] }
   0x5   :  { %v174_v42 = vld [vmem:[%s280_s4] ss:$0 sm:$0xff] }
   0x6   :  { %182 = vmatpush3.bf16.msra.mxu0 %v190_v2  ;;  %v175_v44 = vld [vmem:[%s281_s5] ss:$0 sm:$0xff] }
   0x8   :  { %v31_v6 = vld [vmem:[#allocation2] sm:$0xff]  ;;  %v32_v8 = vld [vmem:[#allocation2 + $0x8] sm:$0xff] }
   0x9   :  { %184 = vmatmul.mubr.msk.bf16.vlgmr.msra.gmra.mrb[0].mxu0 %vm28_vm0, %v35_v5 }
  0xdc   :  { %v90_v7 = vpop.f32.mrb[0].mxu0 }
  0xdd   :  { %v97_v9 = vadd.f32 %v90_v7, %v31_v6  ;;  %v185_v10 = vpop.f32.mrb[1].mxu0 }
  0xde   :  { %v93_v11 = vpop.f32.mrb[2].mxu0 }
  0xdf   :  { %99 = vst.msk [vmem:[#allocation2] sm:$0xff] %vm28_vm0, %v97_v9  ;;  %v98_v12 = vadd.f32 %v93_v11, %v32_v8  ;;  %v186_v13 = vpop.f32.mrb[3].mxu0 }
  0xe1   :  { %100 = vst.msk [vmem:[#allocation2 + $0x8] sm:$0xff] %vm28_vm0, %v98_v12 }
  0xe6   :  { %v104_v15 = vld [vmem:[#allocation2] sm:$0xff] }
  0xe7   :  { %v113_v17 = vadd.f32 %v173_v14, %v104_v15 }
  0xe8   :  { %v105_v18 = vld [vmem:[#allocation2 + $0x8] sm:$0xff] }
  0xe9   :  { %v117_v20 = vadd.f32 %v115_v16, %v113_v17  ;;  %v114_v21 = vadd.f32 %v173_v14, %v105_v18 }
  0xeb   :  { %v119_v22 = vsel %vm28_vm0, %v117_v20, 0.0  ;;  %v118_v23 = vadd.f32 %v116_v19, %v114_v21 }
  0xec   :  { %120 = vadd.xlane.f32.xlu0 %v119_v22 }
  0xed   :  { %v122_v24 = vsel %vm28_vm0, %v118_v23, 0.0 }
  0xf0   :  { %123 = vadd.xlane.f32.xlu0 %v122_v24 }
 0x179   :  { %v121_v25 = vpop.xlane.xlu0 %120 }
 0x17a   :  { %v126_v26 = vmul.f32 0.03125, %v121_v25 }
 0x17c   :  { %v128_v27 = vsub.f32 %v117_v20, %v126_v26 }
 0x17d   :  { %v124_v28 = vpop.xlane.xlu0 %123 }
 0x17e   :  { %v127_v29 = vmul.f32 0.03125, %v124_v28  ;;  %v130_v30 = vmul.f32 %v128_v27, %v128_v27 }
 0x180   :  { %v129_v31 = vsub.f32 %v118_v23, %v127_v29  ;;  %v132_v32 = vsel %vm28_vm0, %v130_v30, 0.0 }
 0x181   :  { %133 = vadd.xlane.f32.xlu1 %v132_v32 }
 0x182   :  { %v131_v33 = vmul.f32 %v129_v31, %v129_v31 }
 0x184   :  { %v135_v34 = vsel %vm28_vm0, %v131_v33, 0.0 }
 0x185   :  { %136 = vadd.xlane.f32.xlu1 %v135_v34 }
 0x20e   :  { %v134_v35 = vpop.xlane.xlu1 %133 }
 0x20f   :  { %v138_v36 = vmul.f32 0.03125, %v134_v35 }
 0x211   :  { %v140_v37 = vadd.f32 1e-12, %v138_v36 }
 0x212   :  { %v137_v38 = vpop.xlane.xlu1 %136 }
 0x213   :  { %191 = vrsqrt.f32 %v140_v37  ;;  %v139_v39 = vmul.f32 0.03125, %v137_v38 }
 0x215   :  { %v141_v40 = vadd.f32 1e-12, %v139_v39 }
 0x217   :  { %193 = vrsqrt.f32 %v141_v40 }
 0x21d   :  { %v192_v41 = vpop.eup %191 }
 0x21e   :  { %v144_v43 = vmul.f32 %v192_v41, %v128_v27 }
 0x220   :  { %v153_v45 = vmul.f32 %v174_v42, %v144_v43 }
 0x221   :  { %v194_v46 = vpop.eup %193 }
 0x222   :  { %v162_v47 = vadd.f32 %v175_v44, %v153_v45  ;;  %v145_v48 = vmul.f32 %v194_v46, %v129_v31 }
 0x224   :  { %164 = vst.msk [vmem:[%s282_s6] sm:$0xff] %vm28_vm0, %v162_v47  ;;  %v154_v49 = vmul.f32 %v174_v42, %v145_v48 }
 0x226   :  { %v163_v50 = vadd.f32 %v175_v44, %v154_v49 }
 0x228   :  { %165 = vst.msk [vmem:[%s282_s6 + $0x8] sm:$0xff] %vm28_vm0, %v163_v50 }

// kernel: bert_forward.13
= control target key start
LH: loop header
LB: loop body
LE: loop exit
PB: predicated region body
PF: predicated region fallthrough
CT: control target
= control target key end

     0   :  { %vm16_vm0 = vcmask 261120   ;;  %s118_s0 = inlined_call_operand.vmem [shape: f32[16,32], index: 0, kind: input, shape index: {}]   ;;  %s119_s1 = inlined_call_operand.vmem [shape: f32[1,32], index: 1, kind: input, shape index: {}]   ;;  %s120_s2 = inlined_call_operand.vmem [shape: f32[1,32], index: 2, kind: input, shape index: {}]   ;;  %s121_s3 = inlined_call_operand.vmem [shape: f32[16,32], index: 3, kind: output, shape index: {}]  }
   0x1   :  { %v14_v0 = vld [vmem:[%s118_s0] sm:$0xff]  ;;  %v15_v1 = vld [vmem:[%s118_s0 + $0x8] sm:$0xff] }
   0x2   :  { %v17_v2 = vsel %vm16_vm0, %v14_v0, 0.0  ;;  %v20_v3 = vsel %vm16_vm0, %v15_v1, 0.0  ;;  %v68_v21 = vld [vmem:[%s119_s1] ss:$0 sm:$0xff] }
   0x3   :  { %18 = vadd.xlane.f32.xlu0 %v17_v2  ;;  %v69_v23 = vld [vmem:[%s120_s2] ss:$0 sm:$0xff] }
   0x7   :  { %21 = vadd.xlane.f32.xlu0 %v20_v3 }
  0x90   :  { %v19_v4 = vpop.xlane.xlu0 %18 }
  0x91   :  { %v24_v5 = vmul.f32 0.03125, %v19_v4 }
  0x93   :  { %v26_v6 = vsub.f32 %v14_v0, %v24_v5 }
  0x94   :  { %v22_v7 = vpop.xlane.xlu0 %21 }
  0x95   :  { %v25_v8 = vmul.f32 0.03125, %v22_v7  ;;  %v28_v9 = vmul.f32 %v26_v6, %v26_v6 }
  0x97   :  { %v27_v10 = vsub.f32 %v15_v1, %v25_v8  ;;  %v30_v11 = vsel %vm16_vm0, %v28_v9, 0.0 }
  0x98   :  { %31 = vadd.xlane.f32.xlu1 %v30_v11 }
  0x99   :  { %v29_v12 = vmul.f32 %v27_v10, %v27_v10 }
  0x9b   :  { %v33_v13 = vsel %vm16_vm0, %v29_v12, 0.0 }
  0x9c   :  { %34 = vadd.xlane.f32.xlu1 %v33_v13 }
 0x125   :  { %v32_v14 = vpop.xlane.xlu1 %31 }
 0x126   :  { %v36_v15 = vmul.f32 0.03125, %v32_v14 }
 0x128   :  { %v38_v16 = vadd.f32 1e-12, %v36_v15 }
 0x129   :  { %v35_v17 = vpop.xlane.xlu1 %34 }
 0x12a   :  { %70 = vrsqrt.f32 %v38_v16  ;;  %v37_v18 = vmul.f32 0.03125, %v35_v17 }
 0x12c   :  { %v39_v19 = vadd.f32 1e-12, %v37_v18 }
 0x12e   :  { %72 = vrsqrt.f32 %v39_v19 }
 0x134   :  { %v71_v20 = vpop.eup %70 }
 0x135   :  { %v42_v22 = vmul.f32 %v71_v20, %v26_v6 }
 0x137   :  { %v51_v24 = vmul.f32 %v68_v21, %v42_v22 }
 0x138   :  { %v73_v25 = vpop.eup %72 }
 0x139   :  { %v60_v26 = vadd.f32 %v69_v23, %v51_v24  ;;  %v43_v27 = vmul.f32 %v73_v25, %v27_v10 }
 0x13b   :  { %62 = vst.msk [vmem:[%s121_s3] sm:$0xff] %vm16_vm0, %v60_v26  ;;  %v52_v28 = vmul.f32 %v68_v21, %v43_v27 }
 0x13d   :  { %v61_v29 = vadd.f32 %v69_v23, %v52_v28 }
 0x13f   :  { %63 = vst.msk [vmem:[%s121_s3 + $0x8] sm:$0xff] %vm16_vm0, %v61_v29 }

// kernel: bert_forward.15
= control target key start
LH: loop header
LB: loop body
LE: loop exit
PB: predicated region body
PF: predicated region fallthrough
CT: control target
= control target key end

     0   :  { %s559_s9 = smov 0   ;;  %s612_s0 = inlined_call_operand.vmem [shape: f32[2,8,96], index: 0, kind: input, shape index: {}]   ;;  %s613_s1 = inlined_call_operand.vmem [shape: f32[2,1,8], index: 1, kind: input, shape index: {}]   ;;  %s614_s2 = inlined_call_operand.vmem [shape: f32[2,8,32], index: 2, kind: output, shape index: {}]  }
   0x1 LB: > { %s458_s10 = sadd.s32 4294967295, %s534_s9   ;;  %p462_p0 = scmp.ge.s32.totalorder %s534_s9, 1  ;;  %s534_s9 = sphi %s559_s9, %s12_s9  }
   0x2   : > { %p119_p1 = scmp.lt.s32.totalorder %s534_s9, 3 }
   0x4   : > { %p120_p2 = pnand %p462_p0, %p119_p1 }
   0x5   : > { %p142_p3 = scmp.lt.s32.totalorder (!%p120_p2), %s458_s10, 1  ;;  %v536_v0 = vmov (!%p120_p2), 0.0   ;;  %vm537_vm0 = vmmov (!%p120_p2), 0   ;;  %s538_s15 = smov (!%p120_p2), 96   ;;  %vm160_vm1 = vcmask (!%p120_p2), 130048   ;;  %vm215_vm2 = vcmask (!%p120_p2), 64512  }
   0x6   : > { %123 = sbr.rel (%p120_p2) target bundleno = 1543 (0x607), region = 28  ;;  %480 = vmatprep.subr.bf16.mxu0 (!%p120_p2), %v536_v0  ;;  %482 = vmatprep.mubr.msk.bf16.mxu0 (!%p120_p2), %vm537_vm0, %v536_v0  ;;  %s539_s16 = smov (!%p120_p2), 64   ;;  %vm233_vm3 = vcmask (!%p120_p2), 1043456   ;;  %vm394_vm4 = vcmask (!%p120_p2), 261120  }
   0x7   : > { %486 = vmatprep.subr.bf16.mxu1 (!%p120_p2), %v536_v0  ;;  %488 = vmatprep.mubr.msk.bf16.mxu1 (!%p120_p2), %vm537_vm0, %v536_v0  ;;  %s540_s20 = smov (!%p120_p2), 80   ;;  %s541_s21 = smov (!%p120_p2), 112  }
   0x8   : > { %s542_s22 = smov (!%p120_p2), 48   ;;  %s543_s23 = smov (!%p120_p2), 16  }
   0xd   : > { %s616_s10 = smov (!%p142_p3, %s458_s10), 1 }
   0xe   : > { %s463_s11 = sshll.u32 %s616_s10, 3  ;;  %s148_s19 = scalar_lea.vmem %s613_s1, %s616_s10 }
   0xf   : > { %s145_s14 = scalar_lea.vmem %s612_s0, %s463_s11  ;;  %v466_v6 = vld [vmem:[%s148_s19] ss:$0 sm:$0xff]  ;;  %s152_s26 = scalar_lea.vmem %s614_s2, %s463_s11 }
  0x10   : > { %v154_v1 = vld [vmem:[%s145_s14] sm:$0xff] }
  0x11   : > { %v577_v2 = vpack.c.bf16 %v154_v1, %v154_v1 }
  0x13   : > { %158 = vrot.lane.b32.xlu0 %v577_v2, %s538_s15  ;;  %228 = vrot.lane.b32.xlu1 %v577_v2, %s539_s16 }
  0x85   : > { %v159_v3 = vpop.permute.xlu0 %158  ;;  %v229_v13 = vpop.permute.xlu1 %228 }
  0x86   : > { %v165_v4 = vsel %vm160_vm1, %v159_v3, 0  ;;  %v235_v14 = vsel %vm233_vm3, %v229_v13, 0 }
  0x87   : > { %481 = vmatpush3.bf16.xpose.msra.mxu0 %v165_v4  ;;  %487 = vmatpush3.bf16.msra.mxu1 %v235_v14 }
  0x88   : > { %498 = vmatprep.subr.bf16.mxu0 %v536_v0  ;;  %492 = vmatprep.subr.bf16.mxu1 %v536_v0 }
  0x8e   : > { %483 = vmatmul.mubr.msk.bf16.vlgmr.msra.gmra.mrb[0].mxu0 %vm160_vm1, %v577_v2 }
  0x8f   : > { %500 = vmatprep.mubr.msk.bf16.mxu0 %vm537_vm0, %v536_v0 }
 0x161   : > { %v201_v5 = vpop.f32.mrb[0].mxu0 }
 0x162   : > { %v207_v7 = vmul.f32 0.25, %v201_v5  ;;  %v484_v8 = vpop.f32.mrb[1].mxu0 }
 0x163   : > { %v204_v9 = vpop.f32.mrb[2].mxu0 }
 0x164   : > { %v485_v10 = vpop.f32.mrb[3].mxu0  ;;  %v214_v11 = vadd.f32 %v466_v6, %v207_v7 }
 0x166   : > { %v216_v12 = vsel %vm215_vm2, %v214_v11, -inf }
 0x167   : > { %217 = vmax.xlane.f32.xlu0 %v216_v12 }
 0x1f4   : > { %v218_v15 = vpop.xlane.xlu0 %217 }
 0x1f5   : > { %v219_v16 = vsub.f32 %v214_v11, %v218_v15 }
 0x1f7   : > { %v220_v17 = vmul.f32 1.442695, %v219_v16 }
 0x1f9   : > { %520 = vpow2.f32 %v220_v17 }
 0x203   : > { %v521_v18 = vpop.eup %520 }
 0x204   : > { %v222_v19 = vsel %vm215_vm2, %v521_v18, 0.0 }
 0x205   : > { %223 = vadd.xlane.f32.xlu1 %v222_v19 }
 0x216   : > { %279 = vrot.lane.b32.xlu1 %v577_v2, %s540_s20 }
 0x21a   : > { %277 = vrot.lane.b32.xlu1 %v577_v2, %s541_s21 }
 0x292   : > { %v224_v20 = vpop.xlane.xlu1 %223 }
 0x293   : > { %522 = vrcp.f32 %v224_v20 }
 0x296   : > { %v280_v22 = vpop.permute.xlu1 %279 }
 0x297   : > { %v285_v24 = vsel %vm160_vm1, %v280_v22, 0 }
 0x29a   : > { %v278_v26 = vpop.permute.xlu1 %277 }
 0x29d   : > { %v523_v21 = vpop.eup %522 }
 0x29e   : > { %v226_v23 = vmul.f32 %v523_v21, %v521_v18 }
 0x2a0   : > { %v227_v25 = vpack.c.bf16 %v226_v23, %v226_v23 }
 0x2a2   : > { %489 = vmatmul.mubr.msk.bf16.vlgmr.msra.gmra.mrb[0].mxu1 %vm215_vm2, %v227_v25 }
 0x2a3   : > { %493 = vmatpush3.bf16.xpose.msra.mxu1 %v285_v24  ;;  %494 = vmatprep.mubr.msk.bf16.mxu1 %vm537_vm0, %v536_v0 }
 0x2aa   : > { %495 = vmatmul.mubr.msk.bf16.vlgmr.msra.gmra.mrb[4].mxu1 %vm160_vm1, %v278_v26 }
 0x375   : > { %v271_v27 = vpop.f32.mrb[0].mxu1 }
 0x376   : > { %v490_v28 = vpop.f32.mrb[1].mxu1 }
 0x377   : > { %v274_v29 = vpop.f32.mrb[2].mxu1 }
 0x378   : > { %v491_v30 = vpop.f32.mrb[3].mxu1 }
 0x37d   : > { %v321_v31 = vpop.f32.mrb[4].mxu1 }
 0x37e   : > { %v327_v32 = vmul.f32 0.25, %v321_v31  ;;  %v496_v33 = vpop.f32.mrb[5].mxu1 }
 0x37f   : > { %v324_v34 = vpop.f32.mrb[6].mxu1 }
 0x380   : > { %v497_v35 = vpop.f32.mrb[7].mxu1  ;;  %v328_v36 = vadd.f32 %v466_v6, %v327_v32 }
 0x382   : > { %v329_v37 = vsel %vm215_vm2, %v328_v36, -inf }
 0x383   : > { %330 = vmax.xlane.f32.xlu1 %v329_v37 }
 0x410   : > { %v331_v38 = vpop.xlane.xlu1 %330 }
 0x411   : > { %v332_v39 = vsub.f32 %v328_v36, %v331_v38 }
 0x413   : > { %v333_v40 = vmul.f32 1.442695, %v332_v39 }
 0x415   : > { %524 = vpow2.f32 %v333_v40 }
 0x41f   : > { %v525_v41 = vpop.eup %524 }
 0x420   : > { %v335_v42 = vsel %vm215_vm2, %v525_v41, 0.0 }
 0x421   : > { %336 = vadd.xlane.f32.xlu0 %v335_v42 }
 0x437   : > { %341 = vrot.lane.b32.xlu0 %v577_v2, %s542_s22 }
 0x4ae   : > { %v337_v43 = vpop.xlane.xlu0 %336 }
 0x4af   : > { %526 = vrcp.f32 %v337_v43 }
 0x4b2   : > { %v342_v44 = vpop.permute.xlu0 %341 }
 0x4b3   : > { %v347_v45 = vsel %vm233_vm3, %v342_v44, 0 }
 0x4b4   : > { %499 = vmatpush3.bf16.msra.mxu0 %v347_v45 }
 0x4b9   : > { %v527_v46 = vpop.eup %526 }
 0x4ba   : > { %v339_v47 = vmul.f32 %v527_v46, %v525_v41 }
 0x4bc   : > { %v340_v48 = vpack.c.bf16 %v339_v47, %v339_v47 }
 0x4be   : > { %501 = vmatmul.mubr.msk.bf16.vlgmr.msra.gmra.mrb[4].mxu0 %vm215_vm2, %v340_v48 }
 0x591   : > { %v383_v49 = vpop.f32.mrb[4].mxu0 }
 0x592   : > { %390 = vrot.lane.b32.xlu0 %v383_v49, %s543_s23  ;;  %v502_v50 = vpop.f32.mrb[5].mxu0 }
 0x593   : > { %v386_v51 = vpop.f32.mrb[6].mxu0 }
 0x594   : > { %v503_v52 = vpop.f32.mrb[7].mxu0 }
 0x604   : > { %v391_v53 = vpop.permute.xlu0 %390 }
 0x605   : > { %v393_v54 = vsel %vm160_vm1, %v271_v27, %v391_v53 }
 0x606   : > { %395 = vst.msk [vmem:[%s152_s26] sm:$0xff] %vm394_vm4, %v393_v54 }
 0x607 PF: > { %s12_s9 = sadd.s32 1, %s534_s9  }
 0x608   : > { %p9_p4 = scmp.ge.s32.totalorder %s12_s9, 4  }
 0x60a   :  { %11 = sbr.rel (!%p9_p4) target bundleno = 1 (0x1), region = 61 }

// kernel: bert_forward.24
= control target key start
LH: loop header
LB: loop body
LE: loop exit
PB: predicated region body
PF: predicated region fallthrough
CT: control target
= control target key end

     0   :  { %vm19_vm0 = vcmask 254976   ;;  %v126_v0 = vmov 0.0   ;;  %vm127_vm1 = vmmov 0   ;;  %vm40_vm2 = vcmask 261120   ;;  %s166_s1 = inlined_call_operand.vmem [shape: bf16[32,32], index: 1, kind: input, shape index: {}]   ;;  %s167_s0 = inlined_call_operand.vmem [shape: f32[2,32], index: 0, kind: input, shape index: {}]   ;;  %s168_s2 = inlined_call_operand.vmem [shape: f32[1,32], index: 2, kind: input, shape index: {}]   ;;  %s169_s3 = inlined_call_operand.vmem [shape: f32[2,32], index: 3, kind: output, shape index: {}]  }
   0x1   :  { %20 = vst.msk [vmem:[#allocation2] sm:$0x3] %vm19_vm0, %v126_v0  ;;  %112 = vmatprep.subr.bf16.mxu0 %v126_v0  ;;  %v122_v1 = vld [vmem:[%s166_s1] sm:$0xff]   ;;  %116 = vmatprep.mubr.msk.bf16.mxu0 %vm127_vm1, %v126_v0  ;;  %v123_v2 = vld [vmem:[%s166_s1 + $0x8] sm:$0xff]  }
   0x2   :  { %113 = vmatpush3.bf16.msra.mxu0 %v122_v1  ;;  %v22_v3 = vld [vmem:[%s167_s0] sm:$0x3] }
   0x3   :  { %114 = vmatprep.subr.bf16.mxu0 %v126_v0  ;;  %v23_v4 = vpack.c.bf16 %v22_v3, %v22_v3  ;;  %v108_v11 = vld [vmem:[%s168_s2] ss:$0 sm:$0xff] }
   0x6   :  { %115 = vmatpush3.bf16.msra.mxu0 %v123_v2 }
   0x8   :  { %v21_v5 = vld [vmem:[#allocation2] sm:$0x3] }
   0x9   :  { %117 = vmatmul.mubr.msk.bf16.vlgmr.msra.gmra.mrb[0].mxu0 %vm40_vm2, %v23_v4 }
  0xdc   :  { %v78_v6 = vpop.f32.mrb[0].mxu0 }
  0xdd   :  { %v84_v7 = vadd.f32 %v78_v6, %v21_v5  ;;  %v118_v8 = vpop.f32.mrb[1].mxu0 }
  0xde   :  { %v81_v9 = vpop.f32.mrb[2].mxu0 }
  0xdf   :  { %86 = vst.msk [vmem:[#allocation2] sm:$0x3] %vm19_vm0, %v84_v7  ;;  %v119_v10 = vpop.f32.mrb[3].mxu0 }
  0xe6   :  { %v90_v12 = vld [vmem:[#allocation2] sm:$0x3] }
  0xe7   :  { %v98_v13 = vadd.f32 %v108_v11, %v90_v12 }
  0xe9   :  { %124 = vtanh.f32 %v98_v13 }
  0xf3   :  { %v125_v14 = vpop.eup %124 }
  0xf4   :  { %100 = vst.msk [vmem:[%s169_s3] sm:$0x3] %vm19_vm0, %v125_v14 }

// kernel: bert_forward.18
= control target key start
LH: loop header
LB: loop body
LE: loop exit
PB: predicated region body
PF: predicated region fallthrough
CT: control target
= control target key end

     0   :  { %vm28_vm0 = vcmask 261120   ;;  %v269_v0 = vmov 0.0   ;;  %vm270_vm1 = vmmov 0   ;;  %s367_s1 = inlined_call_operand.vmem [shape: bf16[128,32], index: 1, kind: input, shape index: {}]   ;;  %s368_s0 = inlined_call_operand.vmem [shape: f32[16,128], index: 0, kind: input, shape index: {}]   ;;  %s369_s2 = inlined_call_operand.vmem [shape: f32[1,32], index: 2, kind: input, shape index: {}]   ;;  %s370_s3 = inlined_call_operand.vmem [shape: f32[16,32], index: 3, kind: input, shape index: {}]   ;;  %s371_s4 = inlined_call_operand.vmem [shape: f32[1,32], index: 4, kind: input, shape index: {}]   ;;  %s372_s5 = inlined_call_operand.vmem [shape: f32[1,32], index: 5, kind: input, shape index: {}]   ;;  %s373_s6 = inlined_call_operand.vmem [shape: f32[16,32], index: 6, kind: output, shape index: {}]  }
   0x1   :  { %235 = vmatprep.subr.bf16.mxu0 %v269_v0  ;;  %v257_v1 = vld [vmem:[%s367_s1] sm:$0xff]   ;;  %251 = vmatprep.mubr.msk.bf16.mxu0 %vm270_vm1, %v269_v0  ;;  %29 = vst.msk [vmem:[#allocation2] sm:$0xff] %vm28_vm0, %v269_v0  ;;  %30 = vst.msk [vmem:[#allocation2 + $0x8] sm:$0xff] %vm28_vm0, %v269_v0  ;;  %v258_v2 = vld [vmem:[%s367_s1 + $0x8] sm:$0xff]  }
   0x2   :  { %236 = vmatpush3.bf16.msra.mxu0 %v257_v1  ;;  %v259_v3 = vld [vmem:[%s367_s1 + $0x10] sm:$0xff]   ;;  %v260_v4 = vld [vmem:[%s367_s1 + $0x18] sm:$0xff]   ;;  %v261_v5 = vld [vmem:[%s367_s1 + $0x20] sm:$0xff]  }
   0x3   :  { %237 = vmatprep.subr.bf16.mxu0 %v269_v0  ;;  %v262_v6 = vld [vmem:[%s367_s1 + $0x28] sm:$0xff]   ;;  %v263_v7 = vld [vmem:[%s367_s1 + $0x30] sm:$0xff]   ;;  %v264_v8 = vld [vmem:[%s367_s1 + $0x38] sm:$0xff]  }
   0x4   :  { %v33_v9 = vld [vmem:[%s368_s0] sm:$0xff]  ;;  %v34_v10 = vld [vmem:[%s368_s0 + $0x8] sm:$0xff] }
   0x5   :  { %v35_v11 = vpack.c.bf16 %v34_v10, %v33_v9  ;;  %v223_v20 = vld [vmem:[%s369_s2] ss:$0 sm:$0xff]  ;;  %v161_v25 = vld [vmem:[%s370_s3 + $0x8] sm:$0xff] }
   0x6   :  { %238 = vmatpush3.bf16.msra.mxu0 %v258_v2  ;;  %v160_v22 = vld [vmem:[%s370_s3] sm:$0xff] }
   0x7   :  { %239 = vmatprep.subr.bf16.mxu0 %v269_v0  ;;  %v224_v48 = vld [vmem:[%s371_s4] ss:$0 sm:$0xff] }
   0x8   :  { %v31_v12 = vld [vmem:[#allocation2] sm:$0xff]  ;;  %v32_v14 = vld [vmem:[#allocation2 + $0x8] sm:$0xff] }
   0x9   :  { %v225_v50 = vld [vmem:[%s372_s5] ss:$0 sm:$0xff] }
   0xa   :  { %240 = vmatpush3.bf16.msra.mxu0 %v259_v3 }
   0xb   :  { %241 = vmatprep.subr.bf16.mxu0 %v269_v0 }
   0xe   :  { %242 = vmatpush3.bf16.msra.mxu0 %v260_v4 }
   0xf   :  { %243 = vmatprep.subr.bf16.mxu0 %v269_v0 }
  0x12   :  { %244 = vmatpush3.bf16.msra.mxu0 %v261_v5 }
  0x13   :  { %245 = vmatprep.subr.bf16.mxu0 %v269_v0 }
  0x16   :  { %246 = vmatpush3.bf16.msra.mxu0 %v262_v6 }
  0x17   :  { %247 = vmatprep.subr.bf16.mxu0 %v269_v0 }
  0x1a   :  { %248 = vmatpush3.bf16.msra.mxu0 %v263_v7 }
  0x1b   :  { %249 = vmatprep.subr.bf16.mxu0 %v269_v0 }
  0x1e   :  { %250 = vmatpush3.bf16.msra.mxu0 %v264_v8 }
  0x21   :  { %252 = vmatmul.mubr.bf16.vlgmr.msra.gmra.mrb[0].mxu0 %v35_v11 }
  0xf4   :  { %v134_v13 = vpop.f32.mrb[0].mxu0 }
  0xf5   :  { %v141_v15 = vadd.f32 %v134_v13, %v31_v12  ;;  %v253_v16 = vpop.f32.mrb[1].mxu0 }
  0xf6   :  { %v137_v17 = vpop.f32.mrb[2].mxu0 }
  0xf7   :  { %144 = vst.msk [vmem:[#allocation2] sm:$0xff] %vm28_vm0, %v141_v15  ;;  %v142_v18 = vadd.f32 %v137_v17, %v32_v14  ;;  %v254_v19 = vpop.f32.mrb[3].mxu0 }
  0xf9   :  { %145 = vst.msk [vmem:[#allocation2 + $0x8] sm:$0xff] %vm28_vm0, %v142_v18 }
  0xfe   :  { %v149_v21 = vld [vmem:[#allocation2] sm:$0xff] }
  0xff   :  { %v158_v23 = vadd.f32 %v223_v20, %v149_v21 }
 0x100   :  { %v150_v24 = vld [vmem:[#allocation2 + $0x8] sm:$0xff] }
 0x101   :  { %v162_v26 = vadd.f32 %v160_v22, %v158_v23  ;;  %v159_v27 = vadd.f32 %v223_v20, %v150_v24 }
 0x103   :  { %v164_v28 = vsel %vm28_vm0, %v162_v26, 0.0  ;;  %v163_v29 = vadd.f32 %v161_v25, %v159_v27 }
 0x104   :  { %165 = vadd.xlane.f32.xlu0 %v164_v28 }
 0x105   :  { %v167_v30 = vsel %vm28_vm0, %v163_v29, 0.0 }
 0x108   :  { %168 = vadd.xlane.f32.xlu0 %v167_v30 }
 0x191   :  { %v166_v31 = vpop.xlane.xlu0 %165 }
 0x192   :  { %v171_v32 = vmul.f32 0.03125, %v166_v31 }
 0x194   :  { %v173_v33 = vsub.f32 %v162_v26, %v171_v32 }
 0x195   :  { %v169_v34 = vpop.xlane.xlu0 %168 }
 0x196   :  { %v172_v35 = vmul.f32 0.03125, %v169_v34  ;;  %v175_v36 = vmul.f32 %v173_v33, %v173_v33 }
 0x198   :  { %v174_v37 = vsub.f32 %v163_v29, %v172_v35  ;;  %v177_v38 = vsel %vm28_vm0, %v175_v36, 0.0 }
 0x199   :  { %178 = vadd.xlane.f32.xlu1 %v177_v38 }
 0x19a   :  { %v176_v39 = vmul.f32 %v174_v37, %v174_v37 }
 0x19c   :  { %v180_v40 = vsel %vm28_vm0, %v176_v39, 0.0 }
 0x19d   :  { %181 = vadd.xlane.f32.xlu1 %v180_v40 }
 0x226   :  { %v179_v41 = vpop.xlane.xlu1 %178 }
 0x227   :  { %v183_v42 = vmul.f32 0.03125, %v179_v41 }
 0x229   :  { %v185_v43 = vadd.f32 1e-12, %v183_v42 }
 0x22a   :  { %v182_v44 = vpop.xlane.xlu1 %181 }
 0x22b   :  { %265 = vrsqrt.f32 %v185_v43  ;;  %v184_v45 = vmul.f32 0.03125, %v182_v44 }
 0x22d   :  { %v186_v46 = vadd.f32 1e-12, %v184_v45 }
 0x22f   :  { %267 = vrsqrt.f32 %v186_v46 }
 0x235   :  { %v266_v47 = vpop.eup %265 }
 0x236   :  { %v189_v49 = vmul.f32 %v266_v47, %v173_v33 }
 0x238   :  { %v198_v51 = vmul.f32 %v224_v48, %v189_v49 }
 0x239   :  { %v268_v52 = vpop.eup %267 }
 0x23a   :  { %v207_v53 = vadd.f32 %v225_v50, %v198_v51  ;;  %v190_v54 = vmul.f32 %v268_v52, %v174_v37 }
 0x23c   :  { %209 = vst.msk [vmem:[%s373_s6] sm:$0xff] %vm28_vm0, %v207_v53  ;;  %v199_v55 = vmul.f32 %v224_v48, %v190_v54 }
 0x23e   :  { %v208_v56 = vadd.f32 %v225_v50, %v199_v55 }
 0x240   :  { %210 = vst.msk [vmem:[%s373_s6 + $0x8] sm:$0xff] %vm28_vm0, %v208_v56 }

// kernel: bert_forward.17
= control target key start
LH: loop header
LB: loop body
LE: loop exit
PB: predicated region body
PF: predicated region fallthrough
CT: control target
= control target key end

     0   :  { %v152_v0 = vmov 0.0   ;;  %vm153_vm0 = vmmov 0   ;;  %vm42_vm1 = vcmask 261120   ;;  %s195_s1 = inlined_call_operand.vmem [shape: bf16[32,128], index: 1, kind: input, shape index: {}]   ;;  %s196_s0 = inlined_call_operand.vmem [shape: f32[16,32], index: 0, kind: input, shape index: {}]   ;;  %s197_s2 = inlined_call_operand.vmem [shape: f32[1,128], index: 2, kind: input, shape index: {}]   ;;  %s198_s3 = inlined_call_operand.vmem [shape: f32[16,128], index: 3, kind: output, shape index: {}]  }
   0x1   :  { %136 = vmatprep.subr.bf16.mxu0 %v152_v0  ;;  %v146_v1 = vld [vmem:[%s195_s1] sm:$0xff]   ;;  %140 = vmatprep.mubr.msk.bf16.mxu0 %vm153_vm0, %v152_v0  ;;  %v147_v2 = vld [vmem:[%s195_s1 + $0x8] sm:$0xff]  }
   0x2   :  { %137 = vmatpush3.bf16.msra.mxu0 %v146_v1  ;;  %v23_v3 = vld [vmem:[%s196_s0] sm:$0xff]  ;;  %v24_v4 = vld [vmem:[%s196_s0 + $0x8] sm:$0xff] }
   0x3   :  { %138 = vmatprep.subr.bf16.mxu0 %v152_v0  ;;  %v25_v5 = vpack.c.bf16 %v24_v4, %v23_v3  ;;  %v132_v6 = vld [vmem:[%s197_s2] ss:$0 sm:$0xff] }
   0x6   :  { %139 = vmatpush3.bf16.msra.mxu0 %v147_v2 }
   0x9   :  { %141 = vmatmul.mubr.msk.bf16.vlgmr.msra.gmra.mrb[0].mxu0 %vm42_vm1, %v25_v5 }
  0xdc   :  { %v80_v7 = vpop.f32.mrb[0].mxu0 }
  0xdd   :  { %v103_v8 = vadd.f32 %v132_v6, %v80_v7  ;;  %v142_v9 = vpop.f32.mrb[1].mxu0 }
  0xde   :  { %v83_v10 = vpop.f32.mrb[2].mxu0 }
  0xdf   :  { %v105_v11 = vmul.f32 %v103_v8, %v103_v8  ;;  %v104_v12 = vadd.f32 %v132_v6, %v83_v10  ;;  %v143_v13 = vpop.f32.mrb[3].mxu0 }
  0xe1   :  { %v107_v14 = vmul.f32 %v105_v11, %v103_v8  ;;  %v106_v15 = vmul.f32 %v104_v12, %v104_v12 }
  0xe3   :  { %v109_v16 = vmul.f32 0.044715, %v107_v14  ;;  %v108_v17 = vmul.f32 %v106_v15, %v104_v12 }
  0xe5   :  { %v111_v18 = vadd.f32 %v109_v16, %v103_v8  ;;  %v110_v19 = vmul.f32 0.044715, %v108_v17 }
  0xe7   :  { %v113_v20 = vmul.f32 0.7978846, %v111_v18  ;;  %v112_v21 = vadd.f32 %v110_v19, %v104_v12 }
  0xe9   :  { %148 = vtanh.f32 %v113_v20  ;;  %v114_v22 = vmul.f32 0.7978846, %v112_v21 }
  0xeb   :  { %150 = vtanh.f32 %v114_v22 }
  0xf3   :  { %v149_v23 = vpop.eup %148 }
  0xf4   :  { %v117_v24 = vadd.f32 1.0, %v149_v23 }
  0xf5   :  { %v151_v25 = vpop.eup %150 }
  0xf6   :  { %v119_v26 = vmul.f32 0.5, %v117_v24  ;;  %v118_v27 = vadd.f32 1.0, %v151_v25 }
  0xf8   :  { %v121_v28 = vmul.f32 %v119_v26, %v103_v8  ;;  %v120_v29 = vmul.f32 0.5, %v118_v27 }
  0xfa   :  { %123 = vst [vmem:[%s198_s3] sm:$0xff] %v121_v28  ;;  %v122_v30 = vmul.f32 %v120_v29, %v104_v12 }
  0xfc   :  { %124 = vst [vmem:[%s198_s3 + $0x8] sm:$0xff] %v122_v30 }

// kernel: bert_forward.25
= control target key start
LH: loop header
LB: loop body
LE: loop exit
PB: predicated region body
PF: predicated region fallthrough
CT: control target
= control target key end

     0   :  { %v159_v1 = vmov 0.0   ;;  %vm160_vm0 = vmmov 0   ;;  %vm20_vm1 = vcmask 25600   ;;  %s209_s0 = inlined_call_operand.vmem [shape: f32[2,32], index: 0, kind: input, shape index: {}]   ;;  %s210_s1 = inlined_call_operand.vmem [shape: bf16[32,4], index: 1, kind: input, shape index: {}]   ;;  %s211_s2 = inlined_call_operand.vmem [shape: f32[1,4], index: 2, kind: input, shape index: {}]   ;;  %s212_s3 = inlined_call_operand.hbm [shape: f32[2,4], index: 3, kind: output, shape index: {}]  }
   0x1   :  { %v133_v0 = vld [vmem:[%s210_s1] sm:$0xff]   ;;  %122 = vmatprep.subr.bf16.mxu0 %v159_v1  ;;  %v134_v2 = vld [vmem:[%s210_s1 + $0x8] sm:$0xff]   ;;  %126 = vmatprep.mubr.msk.bf16.mxu0 %vm160_vm0, %v159_v1 }
   0x2   :  { %123 = vmatpush3.bf16.msra.mxu0 %v133_v0  ;;  %v23_v3 = vld [vmem:[%s209_s0] sm:$0x3] }
   0x3   :  { %8 = vsyncpa [#allocation4], 0  ;;  %124 = vmatprep.subr.bf16.mxu0 %v159_v1  ;;  %21 = vst.msk [vmem:[#allocation2] sm:$0x3] %vm20_vm1, %v159_v1  ;;  %v24_v4 = vpack.c.bf16 %v23_v3, %v23_v3  ;;  %vm41_vm2 = vcmask 261120   ;;  %s161_s0 = smov [#allocation3]  }
   0x4   :  { %v118_v11 = vld [vmem:[%s211_s2] ss:$0 sm:$0xff]  ;;  %s107_s19 = sshll.u32 %s161_s0, 4  ;;  %s108_s19 = int_to_ptr.vmem [resolvable:$true] %s107_s19 }
   0x5   :  { %s135_s20 = scalar_lea.vmem %s108_s19, 32  ;;  %p140_p1 = scmp.lt.s32.totalorder %s108_s19, %s108_s19 }
   0x6   :  { %125 = vmatpush3.bf16.msra.mxu0 %v134_v2  ;;  %p136_p0 = scmp.ne.s32.totalorder %s108_s19, %s135_s20  ;;  %p141_p2 = scmp.lt.s32.totalorder %s135_s20, %s135_s20 }
   0x8   :  { %p142_p3 = por %p141_p2, %p140_p1 }
   0x9   :  { %127 = vmatmul.mubr.msk.bf16.vlgmr.msra.gmra.mrb[0].mxu0 %vm41_vm2, %v24_v4 }
   0xa   :  { %v22_v5 = vld [vmem:[#allocation2] sm:$0x3]  ;;  %p143_p4 = pnand %p142_p3, %p136_p0 }
  0xdc   :  { %v79_v6 = vpop.f32.mrb[0].mxu0 }
  0xdd   :  { %v85_v7 = vadd.f32 %v79_v6, %v22_v5  ;;  %v128_v8 = vpop.f32.mrb[1].mxu0 }
  0xde   :  { %v82_v9 = vpop.f32.mrb[2].mxu0 }
  0xdf   :  { %87 = vst.msk [vmem:[#allocation2] sm:$0x3] %vm20_vm1, %v85_v7  ;;  %v129_v10 = vpop.f32.mrb[3].mxu0 }
  0xe6   :  { %v91_v12 = vld [vmem:[#allocation2] sm:$0x3] }
  0xe7   :  { %v99_v13 = vadd.f32 %v118_v11, %v91_v12 }
  0xe9   :  { %100 = vst.msk [vmem:[#allocation3] sm:$0x3] %vm20_vm1, %v99_v13 }
  0xea   :  { %146 = shalt.err (!%p143_p4)
}
  0xeb   :  { %s147_s23 = scalar_lea.hbm %s212_s3, 32 }
  0xec   :  { %p148_p5 = scmp.ne.s32.totalorder %s212_s3, %s147_s23  ;;  %p151_p6 = scmp.lt.u32.totalorder %s147_s23, %s212_s3 }
  0xee   :  { %p153_p7 = pnand %p151_p6, %p148_p5 }
  0xf0   :  { %156 = shalt.err (!%p153_p7)
}
  0xf1   :  { %110 = dma.vmem_to_hbm [thread:$0]  %s108_s19, 32, %s212_s3, [#allocation4]  }
  0xf2   :  { %157 = dma.done.wait [#allocation4], 32  }
  0xf3   :  { %158 = vsyncadd [#allocation4], 4294967264 }
  0xf4   :  { %114 = vsyncpa [#allocation4], 1 }

</bundles_post_ra>
